<compile_context>
chip_gen: v7x
topology: tpu7x:2x2x1
jax: 0.10.0
libtpu: 0.0.40
codegen_flags: <defaults>
</compile_context>

<pallas_src>
import functools

import jax
import jax.numpy as jnp
from jax.experimental import pallas as pl
from jax.experimental.pallas import tpu as pltpu


def _bottle2neck_kernel(width, nums, dilation,
                        x_ref, w1_ref, b1_ref, g1_ref, be1_ref,
                        wc_ref, bc_ref, gc_ref, bec_ref,
                        w3_ref, b3_ref, g3_ref, be3_ref,
                        sw1_ref, sb1_ref, sw2_ref, sb2_ref,
                        out_ref, cat_ref):
    d = dilation
    x3 = x_ref[...]                                   # (Bb, T, C) f32 residual
    Bb, T, C = x3.shape
    rows = Bb * T
    x = x3.reshape(rows, C)                           # flatten samples -> MXU M

    # ---- conv1 (1x1) -> relu -> bn1 (folded, eval mode) ----
    out1 = jnp.dot(x.astype(jnp.bfloat16), w1_ref[...],
                   preferred_element_type=jnp.float32) + b1_ref[...]
    out1 = jnp.maximum(out1, 0.0)
    out1 = out1 * g1_ref[...] + be1_ref[...]          # (rows, width*scale) f32

    # untouched last split goes straight into the concat scratch
    cat_ref[:, nums * width:(nums + 1) * width] = (
        out1[:, nums * width:(nums + 1) * width])

    # boundary masks for the circular time shifts; they also kill cross-sample
    # contamination on the flattened (Bb*T) row axis.
    t_idx = jax.lax.broadcasted_iota(jnp.int32, (rows, width), 0) % T
    left_ok = t_idx >= d              # rows where x[t-d] exists
    right_ok = t_idx < T - d          # rows where x[t+d] exists

    # ---- Res2Net hierarchical branches (sequential by construction) ----
    sp = None
    for i in range(nums):
        spx_i = out1[:, i * width:(i + 1) * width]    # (rows, width)
        sp = spx_i if i == 0 else sp + spx_i
        left = jnp.where(left_ok, pltpu.roll(sp, d, axis=0), 0.0)            # x[t-d]
        right = jnp.where(right_ok, pltpu.roll(sp, rows - d, axis=0), 0.0)   # x[t+d]
        taps = jnp.concatenate([left, sp, right], axis=1)                    # (rows, 3*width)
        y = jnp.dot(taps.astype(jnp.bfloat16), wc_ref[i],
                    preferred_element_type=jnp.float32) + bc_ref[i]
        y = jnp.maximum(y, 0.0)                       # relu
        y = y * gc_ref[i] + bec_ref[i]                # bn_i (folded)
        sp = y
        cat_ref[:, i * width:(i + 1) * width] = y

    cat = cat_ref[...]                                # (rows, width*scale) f32

    # ---- conv3 (1x1) -> relu -> bn3 (folded) ----
    out3 = jnp.dot(cat.astype(jnp.bfloat16), w3_ref[...],
                   preferred_element_type=jnp.float32) + b3_ref[...]
    out3 = jnp.maximum(out3, 0.0)
    out3 = out3 * g3_ref[...] + be3_ref[...]          # (rows, planes) f32

    # ---- SE: per-sample global avg pool -> fc -> relu -> fc -> sigmoid ----
    out3_3d = out3.reshape(Bb, T, -1)
    s = jnp.mean(out3_3d, axis=1)                     # (Bb, planes) f32
    s = jnp.dot(s.astype(jnp.bfloat16), sw1_ref[...],
                preferred_element_type=jnp.float32) + sb1_ref[...]
    s = jnp.maximum(s, 0.0)
    s = jnp.dot(s.astype(jnp.bfloat16), sw2_ref[...],
                preferred_element_type=jnp.float32) + sb2_ref[...]
    s = jax.nn.sigmoid(s)                             # (Bb, planes) f32

    out_ref[...] = (out3_3d * s[:, None, :] + x3).astype(out_ref.dtype)


def _rep_spec(shape):
    zeros = (0,) * len(shape)
    return pl.BlockSpec(shape, lambda b, _z=zeros: _z)


def _pick_block_b(B, T, target_rows=256):
    """Largest divisor of B such that block_b*T roughly fills the MXU row dim."""
    bb = max(1, min(B, target_rows // max(T, 1)))
    while B % bb:
        bb -= 1
    return bb


def bottle2neck_forward(x, p, block_b=None):
    """x: (B, T, C) float32 (channels-last); p: dict from init_params."""
    B, T, C = x.shape
    width, nums, dilation = p["width"], p["nums"], p["dilation"]
    ws = width * (nums + 1)
    planes = p["w3"].shape[-1]
    bottleneck = p["sw1"].shape[-1]
    assert planes == C, "residual add requires inplanes == planes"
    assert dilation < T, "dilation must be smaller than the sequence length"

    if block_b is None:
        block_b = _pick_block_b(B, T)
    assert B % block_b == 0

    kernel = functools.partial(_bottle2neck_kernel, width, nums, dilation)

    # fuse the 3 conv taps into one (3*width, width) weight; bf16 MXU operands,
    # all bias / folded-BN vectors stay f32.
    bf16 = jnp.bfloat16
    params = {
        "w1": p["w1"].astype(bf16),
        "b1": p["b1"], "g1": p["g1"], "be1": p["be1"],
        "wc": p["wc"].reshape(nums, 3 * width, width).astype(bf16),
        "bc": p["bc"], "gc": p["gc"], "bec": p["bec"],
        "w3": p["w3"].astype(bf16),
        "b3": p["b3"], "g3": p["g3"], "be3": p["be3"],
        "sw1": p["sw1"].astype(bf16), "sb1": p["sb1"],
        "sw2": p["sw2"].astype(bf16), "sb2": p["sb2"],
    }
    names = ["w1", "b1", "g1", "be1", "wc", "bc", "gc", "bec",
             "w3", "b3", "g3", "be3", "sw1", "sb1", "sw2", "sb2"]

    in_specs = [pl.BlockSpec((block_b, T, C), lambda b: (b, 0, 0))]
    in_specs += [_rep_spec(params[n].shape) for n in names]

    flops = 2 * B * T * (C * ws + nums * 3 * width * width + ws * planes)
    flops += 2 * B * 2 * planes * bottleneck
    param_bytes = sum(int(v.size) * v.dtype.itemsize for v in params.values())
    ce = pl.CostEstimate(
        flops=int(flops),
        transcendentals=int(B * planes),          # sigmoid
        bytes_accessed=int(4 * x.size + 4 * B * T * planes + param_bytes),
    )

    grid_spec = pltpu.PrefetchScalarGridSpec(
        num_scalar_prefetch=0,
        grid=(B // block_b,),
        in_specs=in_specs,
        out_specs=pl.BlockSpec((block_b, T, C), lambda b: (b, 0, 0)),
        scratch_shapes=[pltpu.VMEM((block_b * T, ws), jnp.float32)],
    )
    return pl.pallas_call(
        kernel,
        out_shape=jax.ShapeDtypeStruct((B, T, planes), x.dtype),
        grid_spec=grid_spec,
        compiler_params=pltpu.CompilerParams(dimension_semantics=("parallel",)),
        cost_estimate=ce,
    )(x, *[params[n] for n in names])


def init_params(key, inplanes, planes, kernel_size=3, dilation=1, scale=8,
                bottleneck=128, eps=1e-5):
    assert kernel_size == 3, "kernel assumes kernel_size == 3 (ECAPA default)"
    width = planes // scale
    nums = scale - 1
    _ctr = iter(range(1 << 20))

    def next_key():
        return jax.random.fold_in(key, next(_ctr))

    def nrm(shape, s=0.1):
        return jax.random.normal(next_key(), shape, jnp.float32) * s

    def bn_fold(n):
        gamma = jax.random.uniform(next_key(), (n,), jnp.float32, 0.5, 1.5)
        beta = nrm((n,))
        mean = nrm((n,))
        var = jax.random.uniform(next_key(), (n,), jnp.float32, 0.5, 1.5)
        sc = gamma / jnp.sqrt(var + eps)
        sh = beta - mean * sc
        return sc, sh

    ws = width * scale
    p = {"width": width, "nums": nums, "dilation": dilation}
    p["w1"] = nrm((inplanes, ws))
    p["b1"] = nrm((1, ws))
    g1, be1 = bn_fold(ws)
    p["g1"], p["be1"] = g1.reshape(1, ws), be1.reshape(1, ws)

    p["wc"] = nrm((nums, kernel_size, width, width))   # [branch, k, c_in, c_out]
    p["bc"] = nrm((nums, 1, width))
    gc, bec = [], []
    for _ in range(nums):
        g, be = bn_fold(width)
        gc.append(g.reshape(1, width))
        bec.append(be.reshape(1, width))
    p["gc"] = jnp.stack(gc)                            # (nums, 1, width)
    p["bec"] = jnp.stack(bec)

    p["w3"] = nrm((ws, planes))
    p["b3"] = nrm((1, planes))
    g3, be3 = bn_fold(planes)
    p["g3"], p["be3"] = g3.reshape(1, planes), be3.reshape(1, planes)

    p["sw1"] = nrm((planes, bottleneck))
    p["sb1"] = nrm((1, bottleneck))
    p["sw2"] = nrm((bottleneck, planes))
    p["sb2"] = nrm((1, planes))
    return p


def reference(x, p):
    """Plain-JAX f32 reference of the same forward pass (for verification)."""
    width, nums, d = p["width"], p["nums"], p["dilation"]
    T = x.shape[1]
    out1 = jnp.maximum(jnp.einsum("btc,cd->btd", x, p["w1"]) + p["b1"], 0.0)
    out1 = out1 * p["g1"] + p["be1"]
    sp = None
    pieces = []
    for i in range(nums):
        spx_i = out1[..., i * width:(i + 1) * width]
        sp = spx_i if i == 0 else sp + spx_i
        pad = jnp.pad(sp, ((0, 0), (d, d), (0, 0)))
        y = (jnp.einsum("btc,cd->btd", pad[:, 0:T], p["wc"][i, 0])
             + jnp.einsum("btc,cd->btd", pad[:, d:d + T], p["wc"][i, 1])
             + jnp.einsum("btc,cd->btd", pad[:, 2 * d:2 * d + T], p["wc"][i, 2])
             + p["bc"][i])
        y = jnp.maximum(y, 0.0) * p["gc"][i] + p["bec"][i]
        sp = y
        pieces.append(y)
    pieces.append(out1[..., nums * width:(nums + 1) * width])
    cat = jnp.concatenate(pieces, axis=-1)
    out3 = jnp.maximum(jnp.einsum("btc,cd->btd", cat, p["w3"]) + p["b3"], 0.0)
    out3 = out3 * p["g3"] + p["be3"]
    s = jnp.mean(out3, axis=1, keepdims=True)
    s = jnp.maximum(jnp.einsum("bic,cd->bid", s, p["sw1"]) + p["sb1"], 0.0)
    s = jax.nn.sigmoid(jnp.einsum("bic,cd->bid", s, p["sw2"]) + p["sb2"])
    return out3 * s + x


if __name__ == "__main__":
    key = jax.random.PRNGKey(0)
    B, T = 2, 16
    inplanes = planes = 64          # residual add requires inplanes == planes
    k_params, k_x = jax.random.split(key)
    params = init_params(k_params, inplanes, planes, kernel_size=3, dilation=1, scale=8)
    # torch input (B, C, T) = (2, 64, 16) is carried here channels-last as (B, T, C)
    x = jax.random.normal(k_x, (B, T, inplanes), jnp.float32)

    out = jax.block_until_ready(bottle2neck_forward(x, params))
    ref = reference(x, params)
    assert out.shape == (B, T, planes)
    # bf16 MXU operands (f32 accumulation) -> relaxed tolerance vs f32 reference
    err = float(jnp.max(jnp.abs(out - ref)))
    assert err < 1e-1, err
    print("KERNEL_OK")
</pallas_src>

<mosaic_0001>
module attributes {stable_mosaic.version = 11 : i64} {
  func.func @_bottle2neck_kernel(%arg0: i32, %arg1: memref<2x16x64xf32, #tpu.memory_space<vmem>>, %arg2: memref<64x64xbf16, #tpu.memory_space<vmem>>, %arg3: memref<1x64xf32, #tpu.memory_space<vmem>>, %arg4: memref<1x64xf32, #tpu.memory_space<vmem>>, %arg5: memref<1x64xf32, #tpu.memory_space<vmem>>, %arg6: memref<7x24x8xbf16, #tpu.memory_space<vmem>>, %arg7: memref<7x1x8xf32, #tpu.memory_space<vmem>>, %arg8: memref<7x1x8xf32, #tpu.memory_space<vmem>>, %arg9: memref<7x1x8xf32, #tpu.memory_space<vmem>>, %arg10: memref<64x64xbf16, #tpu.memory_space<vmem>>, %arg11: memref<1x64xf32, #tpu.memory_space<vmem>>, %arg12: memref<1x64xf32, #tpu.memory_space<vmem>>, %arg13: memref<1x64xf32, #tpu.memory_space<vmem>>, %arg14: memref<64x128xbf16, #tpu.memory_space<vmem>>, %arg15: memref<1x128xf32, #tpu.memory_space<vmem>>, %arg16: memref<128x64xbf16, #tpu.memory_space<vmem>>, %arg17: memref<1x64xf32, #tpu.memory_space<vmem>>, %arg18: memref<2x16x64xf32, #tpu.memory_space<vmem>>, %arg19: memref<32x64xf32, #tpu.memory_space<vmem>>) attributes {dimension_semantics = [#tpu.dimension_semantics<parallel>], iteration_bounds = array<i64: 1>, scalar_prefetch = 0 : i64, scratch_operands = 1 : i64, tpu.core_type = #tpu.core_type<tc>, window_params = [{transform_indices = @transform_0, window_bounds = array<i64: 2, 16, 64>}, {pipeline_mode = #tpu.pipeline_mode<synchronous>, transform_indices = @transform_1, window_bounds = array<i64: 64, 64>}, {pipeline_mode = #tpu.pipeline_mode<synchronous>, transform_indices = @transform_2, window_bounds = array<i64: 1, 64>}, {pipeline_mode = #tpu.pipeline_mode<synchronous>, transform_indices = @transform_3, window_bounds = array<i64: 1, 64>}, {pipeline_mode = #tpu.pipeline_mode<synchronous>, transform_indices = @transform_4, window_bounds = array<i64: 1, 64>}, {pipeline_mode = #tpu.pipeline_mode<synchronous>, transform_indices = @transform_5, window_bounds = array<i64: 7, 24, 8>}, {pipeline_mode = #tpu.pipeline_mode<synchronous>, transform_indices = @transform_6, window_bounds = array<i64: 7, 1, 8>}, {pipeline_mode = #tpu.pipeline_mode<synchronous>, transform_indices = @transform_7, window_bounds = array<i64: 7, 1, 8>}, {pipeline_mode = #tpu.pipeline_mode<synchronous>, transform_indices = @transform_8, window_bounds = array<i64: 7, 1, 8>}, {pipeline_mode = #tpu.pipeline_mode<synchronous>, transform_indices = @transform_9, window_bounds = array<i64: 64, 64>}, {pipeline_mode = #tpu.pipeline_mode<synchronous>, transform_indices = @transform_10, window_bounds = array<i64: 1, 64>}, {pipeline_mode = #tpu.pipeline_mode<synchronous>, transform_indices = @transform_11, window_bounds = array<i64: 1, 64>}, {pipeline_mode = #tpu.pipeline_mode<synchronous>, transform_indices = @transform_12, window_bounds = array<i64: 1, 64>}, {pipeline_mode = #tpu.pipeline_mode<synchronous>, transform_indices = @transform_13, window_bounds = array<i64: 64, 128>}, {pipeline_mode = #tpu.pipeline_mode<synchronous>, transform_indices = @transform_14, window_bounds = array<i64: 1, 128>}, {pipeline_mode = #tpu.pipeline_mode<synchronous>, transform_indices = @transform_15, window_bounds = array<i64: 128, 64>}, {pipeline_mode = #tpu.pipeline_mode<synchronous>, transform_indices = @transform_16, window_bounds = array<i64: 1, 64>}, {transform_indices = @transform_17, window_bounds = array<i64: 2, 16, 64>}]} {
    %c0 = arith.constant 0 : index
    %c0_0 = arith.constant 0 : index
    %c0_1 = arith.constant 0 : index
    %0 = vector.load %arg1[%c0, %c0_0, %c0_1] : memref<2x16x64xf32, #tpu.memory_space<vmem>>, vector<2x16x64xf32>
    %1 = vector.shape_cast %0 : vector<2x16x64xf32> to vector<32x64xf32>
    %2 = arith.truncf %1 : vector<32x64xf32> to vector<32x64xbf16>
    %c0_2 = arith.constant 0 : index
    %c0_3 = arith.constant 0 : index
    %3 = vector.load %arg2[%c0_2, %c0_3] : memref<64x64xbf16, #tpu.memory_space<vmem>>, vector<64x64xbf16>
    %cst = arith.constant dense<0.000000e+00> : vector<32x64xf32>
    %4 = tpu.matmul %2, %3, %cst {dimension_numbers = #tpu.dot_dimension_numbers<[1], [0], [0], [1], [0, 0, 1, 1], [], []>} : vector<32x64xbf16>, vector<64x64xbf16>, vector<32x64xf32> -> vector<32x64xf32>
    %c0_4 = arith.constant 0 : index
    %c0_5 = arith.constant 0 : index
    %5 = vector.load %arg3[%c0_4, %c0_5] : memref<1x64xf32, #tpu.memory_space<vmem>>, vector<1x64xf32>
    %6 = vector.broadcast %5 : vector<1x64xf32> to vector<32x64xf32>
    %7 = arith.addf %4, %6 : vector<32x64xf32>
    %cst_6 = arith.constant 0.000000e+00 : f32
    %8 = vector.broadcast %cst_6 : f32 to vector<32x64xf32>
    %9 = arith.maximumf %7, %8 : vector<32x64xf32>
    %c0_7 = arith.constant 0 : index
    %c0_8 = arith.constant 0 : index
    %10 = vector.load %arg4[%c0_7, %c0_8] : memref<1x64xf32, #tpu.memory_space<vmem>>, vector<1x64xf32>
    %11 = vector.broadcast %10 : vector<1x64xf32> to vector<32x64xf32>
    %12 = arith.mulf %9, %11 : vector<32x64xf32>
    %c0_9 = arith.constant 0 : index
    %c0_10 = arith.constant 0 : index
    %13 = vector.load %arg5[%c0_9, %c0_10] : memref<1x64xf32, #tpu.memory_space<vmem>>, vector<1x64xf32>
    %14 = vector.broadcast %13 : vector<1x64xf32> to vector<32x64xf32>
    %15 = arith.addf %12, %14 : vector<32x64xf32>
    %16 = vector.extract_strided_slice %15 {offsets = [0, 56], sizes = [32, 8], strides = [1, 1]} : vector<32x64xf32> to vector<32x8xf32>
    %c0_11 = arith.constant 0 : index
    %c56 = arith.constant 56 : index
    %17 = vector.load %arg19[%c0_11, %c56] : memref<32x64xf32, #tpu.memory_space<vmem>>, vector<32x8xf32>
    tpu.vector_store %arg19[%c0_11, %c56], %16 {strides = array<i32>} : memref<32x64xf32, #tpu.memory_space<vmem>>, vector<32x8xf32>,
    %18 = tpu.iota {dimensions = array<i32: 0>} : vector<32x8xi32>
    %c16_i32 = arith.constant 16 : i32
    %c0_i32 = arith.constant 0 : i32
    %19 = arith.cmpi eq, %c16_i32, %c0_i32 : i32
    %c1_i32 = arith.constant 1 : i32
    %20 = arith.select %19, %c1_i32, %c16_i32 : i32
    %21 = vector.broadcast %20 : i32 to vector<32x8xi32>
    %22 = arith.remsi %18, %21 : vector<32x8xi32>
    %c0_i32_12 = arith.constant 0 : i32
    %23 = vector.broadcast %c0_i32_12 : i32 to vector<32x8xi32>
    %24 = arith.cmpi ne, %22, %23 : vector<32x8xi32>
    %c0_i32_13 = arith.constant 0 : i32
    %25 = vector.broadcast %c0_i32_13 : i32 to vector<32x8xi32>
    %26 = arith.cmpi slt, %22, %25 : vector<32x8xi32>
    %c0_i32_14 = arith.constant 0 : i32
    %27 = arith.cmpi slt, %20, %c0_i32_14 : i32
    %28 = vector.broadcast %27 : i1 to vector<32x8xi1>
    %29 = vector.broadcast %28 : vector<32x8xi1> to vector<32x8xi1>
    %30 = arith.xori %26, %29 : vector<32x8xi1>
    %31 = arith.andi %30, %24 : vector<32x8xi1>
    %32 = vector.broadcast %20 : i32 to vector<32x8xi32>
    %33 = arith.addi %22, %32 : vector<32x8xi32>
    %34 = arith.select %31, %33, %22 : vector<32x8xi1>, vector<32x8xi32>
    %c1_i32_15 = arith.constant 1 : i32
    %35 = vector.broadcast %c1_i32_15 : i32 to vector<32x8xi32>
    %36 = arith.cmpi sge, %34, %35 : vector<32x8xi32>
    %c15_i32 = arith.constant 15 : i32
    %37 = vector.broadcast %c15_i32 : i32 to vector<32x8xi32>
    %38 = arith.cmpi slt, %34, %37 : vector<32x8xi32>
    %39 = vector.extract_strided_slice %15 {offsets = [0, 0], sizes = [32, 8], strides = [1, 1]} : vector<32x64xf32> to vector<32x8xf32>
    %c1_i32_16 = arith.constant 1 : i32
    %40 = tpu.dynamic_rotate %39 by %c1_i32_16 dim 0 : vector<32x8xf32>, i32 -> vector<32x8xf32>
    %cst_17 = arith.constant 0.000000e+00 : f32
    %41 = vector.broadcast %cst_17 : f32 to vector<32x8xf32>
    %42 = arith.select %36, %40, %41 : vector<32x8xi1>, vector<32x8xf32>
    %c31_i32 = arith.constant 31 : i32
    %43 = tpu.dynamic_rotate %39 by %c31_i32 dim 0 : vector<32x8xf32>, i32 -> vector<32x8xf32>
    %cst_18 = arith.constant 0.000000e+00 : f32
    %44 = vector.broadcast %cst_18 : f32 to vector<32x8xf32>
    %45 = arith.select %38, %43, %44 : vector<32x8xi1>, vector<32x8xf32>
    %46 = tpu.concatenate %42, %39, %45 in 1 : vector<32x8xf32>, vector<32x8xf32>, vector<32x8xf32> -> vector<32x24xf32>
    %47 = arith.truncf %46 : vector<32x24xf32> to vector<32x24xbf16>
    %c0_19 = arith.constant 0 : index
    %c0_20 = arith.constant 0 : index
    %c0_21 = arith.constant 0 : index
    %48 = vector.load %arg6[%c0_19, %c0_20, %c0_21] : memref<7x24x8xbf16, #tpu.memory_space<vmem>>, vector<1x24x8xbf16>
    %49 = vector.shape_cast %48 : vector<1x24x8xbf16> to vector<24x8xbf16>
    %cst_22 = arith.constant dense<0.000000e+00> : vector<32x8xf32>
    %50 = tpu.matmul %47, %49, %cst_22 {dimension_numbers = #tpu.dot_dimension_numbers<[1], [0], [0], [1], [0, 0, 1, 1], [], []>} : vector<32x24xbf16>, vector<24x8xbf16>, vector<32x8xf32> -> vector<32x8xf32>
    %c0_23 = arith.constant 0 : index
    %c0_24 = arith.constant 0 : index
    %c0_25 = arith.constant 0 : index
    %51 = vector.load %arg7[%c0_23, %c0_24, %c0_25] : memref<7x1x8xf32, #tpu.memory_space<vmem>>, vector<1x1x8xf32>
    %52 = vector.shape_cast %51 : vector<1x1x8xf32> to vector<1x8xf32>
    %53 = vector.broadcast %52 : vector<1x8xf32> to vector<32x8xf32>
    %54 = arith.addf %50, %53 : vector<32x8xf32>
    %cst_26 = arith.constant 0.000000e+00 : f32
    %55 = vector.broadcast %cst_26 : f32 to vector<32x8xf32>
    %56 = arith.maximumf %54, %55 : vector<32x8xf32>
    %c0_27 = arith.constant 0 : index
    %c0_28 = arith.constant 0 : index
    %c0_29 = arith.constant 0 : index
    %57 = vector.load %arg8[%c0_27, %c0_28, %c0_29] : memref<7x1x8xf32, #tpu.memory_space<vmem>>, vector<1x1x8xf32>
    %58 = vector.shape_cast %57 : vector<1x1x8xf32> to vector<1x8xf32>
    %59 = vector.broadcast %58 : vector<1x8xf32> to vector<32x8xf32>
    %60 = arith.mulf %56, %59 : vector<32x8xf32>
    %c0_30 = arith.constant 0 : index
    %c0_31 = arith.constant 0 : index
    %c0_32 = arith.constant 0 : index
    %61 = vector.load %arg9[%c0_30, %c0_31, %c0_32] : memref<7x1x8xf32, #tpu.memory_space<vmem>>, vector<1x1x8xf32>
    %62 = vector.shape_cast %61 : vector<1x1x8xf32> to vector<1x8xf32>
    %63 = vector.broadcast %62 : vector<1x8xf32> to vector<32x8xf32>
    %64 = arith.addf %60, %63 : vector<32x8xf32>
    %c0_33 = arith.constant 0 : index
    %c0_34 = arith.constant 0 : index
    %65 = vector.load %arg19[%c0_33, %c0_34] : memref<32x64xf32, #tpu.memory_space<vmem>>, vector<32x8xf32>
    tpu.vector_store %arg19[%c0_33, %c0_34], %64 {strides = array<i32>} : memref<32x64xf32, #tpu.memory_space<vmem>>, vector<32x8xf32>,
    %66 = vector.extract_strided_slice %15 {offsets = [0, 8], sizes = [32, 8], strides = [1, 1]} : vector<32x64xf32> to vector<32x8xf32>
    %67 = arith.addf %64, %66 : vector<32x8xf32>
    %c1_i32_35 = arith.constant 1 : i32
    %68 = tpu.dynamic_rotate %67 by %c1_i32_35 dim 0 : vector<32x8xf32>, i32 -> vector<32x8xf32>
    %cst_36 = arith.constant 0.000000e+00 : f32
    %69 = vector.broadcast %cst_36 : f32 to vector<32x8xf32>
    %70 = arith.select %36, %68, %69 : vector<32x8xi1>, vector<32x8xf32>
    %c31_i32_37 = arith.constant 31 : i32
    %71 = tpu.dynamic_rotate %67 by %c31_i32_37 dim 0 : vector<32x8xf32>, i32 -> vector<32x8xf32>
    %cst_38 = arith.constant 0.000000e+00 : f32
    %72 = vector.broadcast %cst_38 : f32 to vector<32x8xf32>
    %73 = arith.select %38, %71, %72 : vector<32x8xi1>, vector<32x8xf32>
    %74 = tpu.concatenate %70, %67, %73 in 1 : vector<32x8xf32>, vector<32x8xf32>, vector<32x8xf32> -> vector<32x24xf32>
    %75 = arith.truncf %74 : vector<32x24xf32> to vector<32x24xbf16>
    %c1 = arith.constant 1 : index
    %c0_39 = arith.constant 0 : index
    %c0_40 = arith.constant 0 : index
    %76 = vector.load %arg6[%c1, %c0_39, %c0_40] : memref<7x24x8xbf16, #tpu.memory_space<vmem>>, vector<1x24x8xbf16>
    %77 = vector.shape_cast %76 : vector<1x24x8xbf16> to vector<24x8xbf16>
    %cst_41 = arith.constant dense<0.000000e+00> : vector<32x8xf32>
    %78 = tpu.matmul %75, %77, %cst_41 {dimension_numbers = #tpu.dot_dimension_numbers<[1], [0], [0], [1], [0, 0, 1, 1], [], []>} : vector<32x24xbf16>, vector<24x8xbf16>, vector<32x8xf32> -> vector<32x8xf32>
    %c1_42 = arith.constant 1 : index
    %c0_43 = arith.constant 0 : index
    %c0_44 = arith.constant 0 : index
    %79 = vector.load %arg7[%c1_42, %c0_43, %c0_44] : memref<7x1x8xf32, #tpu.memory_space<vmem>>, vector<1x1x8xf32>
    %80 = vector.shape_cast %79 : vector<1x1x8xf32> to vector<1x8xf32>
    %81 = vector.broadcast %80 : vector<1x8xf32> to vector<32x8xf32>
    %82 = arith.addf %78, %81 : vector<32x8xf32>
    %cst_45 = arith.constant 0.000000e+00 : f32
    %83 = vector.broadcast %cst_45 : f32 to vector<32x8xf32>
    %84 = arith.maximumf %82, %83 : vector<32x8xf32>
    %c1_46 = arith.constant 1 : index
    %c0_47 = arith.constant 0 : index
    %c0_48 = arith.constant 0 : index
    %85 = vector.load %arg8[%c1_46, %c0_47, %c0_48] : memref<7x1x8xf32, #tpu.memory_space<vmem>>, vector<1x1x8xf32>
    %86 = vector.shape_cast %85 : vector<1x1x8xf32> to vector<1x8xf32>
    %87 = vector.broadcast %86 : vector<1x8xf32> to vector<32x8xf32>
    %88 = arith.mulf %84, %87 : vector<32x8xf32>
    %c1_49 = arith.constant 1 : index
    %c0_50 = arith.constant 0 : index
    %c0_51 = arith.constant 0 : index
    %89 = vector.load %arg9[%c1_49, %c0_50, %c0_51] : memref<7x1x8xf32, #tpu.memory_space<vmem>>, vector<1x1x8xf32>
    %90 = vector.shape_cast %89 : vector<1x1x8xf32> to vector<1x8xf32>
    %91 = vector.broadcast %90 : vector<1x8xf32> to vector<32x8xf32>
    %92 = arith.addf %88, %91 : vector<32x8xf32>
    %c0_52 = arith.constant 0 : index
    %c8 = arith.constant 8 : index
    %93 = vector.load %arg19[%c0_52, %c8] : memref<32x64xf32, #tpu.memory_space<vmem>>, vector<32x8xf32>
    tpu.vector_store %arg19[%c0_52, %c8], %92 {strides = array<i32>} : memref<32x64xf32, #tpu.memory_space<vmem>>, vector<32x8xf32>,
    %94 = vector.extract_strided_slice %15 {offsets = [0, 16], sizes = [32, 8], strides = [1, 1]} : vector<32x64xf32> to vector<32x8xf32>
    %95 = arith.addf %92, %94 : vector<32x8xf32>
    %c1_i32_53 = arith.constant 1 : i32
    %96 = tpu.dynamic_rotate %95 by %c1_i32_53 dim 0 : vector<32x8xf32>, i32 -> vector<32x8xf32>
    %cst_54 = arith.constant 0.000000e+00 : f32
    %97 = vector.broadcast %cst_54 : f32 to vector<32x8xf32>
    %98 = arith.select %36, %96, %97 : vector<32x8xi1>, vector<32x8xf32>
    %c31_i32_55 = arith.constant 31 : i32
    %99 = tpu.dynamic_rotate %95 by %c31_i32_55 dim 0 : vector<32x8xf32>, i32 -> vector<32x8xf32>
    %cst_56 = arith.constant 0.000000e+00 : f32
    %100 = vector.broadcast %cst_56 : f32 to vector<32x8xf32>
    %101 = arith.select %38, %99, %100 : vector<32x8xi1>, vector<32x8xf32>
    %102 = tpu.concatenate %98, %95, %101 in 1 : vector<32x8xf32>, vector<32x8xf32>, vector<32x8xf32> -> vector<32x24xf32>
    %103 = arith.truncf %102 : vector<32x24xf32> to vector<32x24xbf16>
    %c2 = arith.constant 2 : index
    %c0_57 = arith.constant 0 : index
    %c0_58 = arith.constant 0 : index
    %104 = vector.load %arg6[%c2, %c0_57, %c0_58] : memref<7x24x8xbf16, #tpu.memory_space<vmem>>, vector<1x24x8xbf16>
    %105 = vector.shape_cast %104 : vector<1x24x8xbf16> to vector<24x8xbf16>
    %cst_59 = arith.constant dense<0.000000e+00> : vector<32x8xf32>
    %106 = tpu.matmul %103, %105, %cst_59 {dimension_numbers = #tpu.dot_dimension_numbers<[1], [0], [0], [1], [0, 0, 1, 1], [], []>} : vector<32x24xbf16>, vector<24x8xbf16>, vector<32x8xf32> -> vector<32x8xf32>
    %c2_60 = arith.constant 2 : index
    %c0_61 = arith.constant 0 : index
    %c0_62 = arith.constant 0 : index
    %107 = vector.load %arg7[%c2_60, %c0_61, %c0_62] : memref<7x1x8xf32, #tpu.memory_space<vmem>>, vector<1x1x8xf32>
    %108 = vector.shape_cast %107 : vector<1x1x8xf32> to vector<1x8xf32>
    %109 = vector.broadcast %108 : vector<1x8xf32> to vector<32x8xf32>
    %110 = arith.addf %106, %109 : vector<32x8xf32>
    %cst_63 = arith.constant 0.000000e+00 : f32
    %111 = vector.broadcast %cst_63 : f32 to vector<32x8xf32>
    %112 = arith.maximumf %110, %111 : vector<32x8xf32>
    %c2_64 = arith.constant 2 : index
    %c0_65 = arith.constant 0 : index
    %c0_66 = arith.constant 0 : index
    %113 = vector.load %arg8[%c2_64, %c0_65, %c0_66] : memref<7x1x8xf32, #tpu.memory_space<vmem>>, vector<1x1x8xf32>
    %114 = vector.shape_cast %113 : vector<1x1x8xf32> to vector<1x8xf32>
    %115 = vector.broadcast %114 : vector<1x8xf32> to vector<32x8xf32>
    %116 = arith.mulf %112, %115 : vector<32x8xf32>
    %c2_67 = arith.constant 2 : index
    %c0_68 = arith.constant 0 : index
    %c0_69 = arith.constant 0 : index
    %117 = vector.load %arg9[%c2_67, %c0_68, %c0_69] : memref<7x1x8xf32, #tpu.memory_space<vmem>>, vector<1x1x8xf32>
    %118 = vector.shape_cast %117 : vector<1x1x8xf32> to vector<1x8xf32>
    %119 = vector.broadcast %118 : vector<1x8xf32> to vector<32x8xf32>
    %120 = arith.addf %116, %119 : vector<32x8xf32>
    %c0_70 = arith.constant 0 : index
    %c16 = arith.constant 16 : index
    %121 = vector.load %arg19[%c0_70, %c16] : memref<32x64xf32, #tpu.memory_space<vmem>>, vector<32x8xf32>
    tpu.vector_store %arg19[%c0_70, %c16], %120 {strides = array<i32>} : memref<32x64xf32, #tpu.memory_space<vmem>>, vector<32x8xf32>,
    %122 = vector.extract_strided_slice %15 {offsets = [0, 24], sizes = [32, 8], strides = [1, 1]} : vector<32x64xf32> to vector<32x8xf32>
    %123 = arith.addf %120, %122 : vector<32x8xf32>
    %c1_i32_71 = arith.constant 1 : i32
    %124 = tpu.dynamic_rotate %123 by %c1_i32_71 dim 0 : vector<32x8xf32>, i32 -> vector<32x8xf32>
    %cst_72 = arith.constant 0.000000e+00 : f32
    %125 = vector.broadcast %cst_72 : f32 to vector<32x8xf32>
    %126 = arith.select %36, %124, %125 : vector<32x8xi1>, vector<32x8xf32>
    %c31_i32_73 = arith.constant 31 : i32
    %127 = tpu.dynamic_rotate %123 by %c31_i32_73 dim 0 : vector<32x8xf32>, i32 -> vector<32x8xf32>
    %cst_74 = arith.constant 0.000000e+00 : f32
    %128 = vector.broadcast %cst_74 : f32 to vector<32x8xf32>
    %129 = arith.select %38, %127, %128 : vector<32x8xi1>, vector<32x8xf32>
    %130 = tpu.concatenate %126, %123, %129 in 1 : vector<32x8xf32>, vector<32x8xf32>, vector<32x8xf32> -> vector<32x24xf32>
    %131 = arith.truncf %130 : vector<32x24xf32> to vector<32x24xbf16>
    %c3 = arith.constant 3 : index
    %c0_75 = arith.constant 0 : index
    %c0_76 = arith.constant 0 : index
    %132 = vector.load %arg6[%c3, %c0_75, %c0_76] : memref<7x24x8xbf16, #tpu.memory_space<vmem>>, vector<1x24x8xbf16>
    %133 = vector.shape_cast %132 : vector<1x24x8xbf16> to vector<24x8xbf16>
    %cst_77 = arith.constant dense<0.000000e+00> : vector<32x8xf32>
    %134 = tpu.matmul %131, %133, %cst_77 {dimension_numbers = #tpu.dot_dimension_numbers<[1], [0], [0], [1], [0, 0, 1, 1], [], []>} : vector<32x24xbf16>, vector<24x8xbf16>, vector<32x8xf32> -> vector<32x8xf32>
    %c3_78 = arith.constant 3 : index
    %c0_79 = arith.constant 0 : index
    %c0_80 = arith.constant 0 : index
    %135 = vector.load %arg7[%c3_78, %c0_79, %c0_80] : memref<7x1x8xf32, #tpu.memory_space<vmem>>, vector<1x1x8xf32>
    %136 = vector.shape_cast %135 : vector<1x1x8xf32> to vector<1x8xf32>
    %137 = vector.broadcast %136 : vector<1x8xf32> to vector<32x8xf32>
    %138 = arith.addf %134, %137 : vector<32x8xf32>
    %cst_81 = arith.constant 0.000000e+00 : f32
    %139 = vector.broadcast %cst_81 : f32 to vector<32x8xf32>
    %140 = arith.maximumf %138, %139 : vector<32x8xf32>
    %c3_82 = arith.constant 3 : index
    %c0_83 = arith.constant 0 : index
    %c0_84 = arith.constant 0 : index
    %141 = vector.load %arg8[%c3_82, %c0_83, %c0_84] : memref<7x1x8xf32, #tpu.memory_space<vmem>>, vector<1x1x8xf32>
    %142 = vector.shape_cast %141 : vector<1x1x8xf32> to vector<1x8xf32>
    %143 = vector.broadcast %142 : vector<1x8xf32> to vector<32x8xf32>
    %144 = arith.mulf %140, %143 : vector<32x8xf32>
    %c3_85 = arith.constant 3 : index
    %c0_86 = arith.constant 0 : index
    %c0_87 = arith.constant 0 : index
    %145 = vector.load %arg9[%c3_85, %c0_86, %c0_87] : memref<7x1x8xf32, #tpu.memory_space<vmem>>, vector<1x1x8xf32>
    %146 = vector.shape_cast %145 : vector<1x1x8xf32> to vector<1x8xf32>
    %147 = vector.broadcast %146 : vector<1x8xf32> to vector<32x8xf32>
    %148 = arith.addf %144, %147 : vector<32x8xf32>
    %c0_88 = arith.constant 0 : index
    %c24 = arith.constant 24 : index
    %149 = vector.load %arg19[%c0_88, %c24] : memref<32x64xf32, #tpu.memory_space<vmem>>, vector<32x8xf32>
    tpu.vector_store %arg19[%c0_88, %c24], %148 {strides = array<i32>} : memref<32x64xf32, #tpu.memory_space<vmem>>, vector<32x8xf32>,
    %150 = vector.extract_strided_slice %15 {offsets = [0, 32], sizes = [32, 8], strides = [1, 1]} : vector<32x64xf32> to vector<32x8xf32>
    %151 = arith.addf %148, %150 : vector<32x8xf32>
    %c1_i32_89 = arith.constant 1 : i32
    %152 = tpu.dynamic_rotate %151 by %c1_i32_89 dim 0 : vector<32x8xf32>, i32 -> vector<32x8xf32>
    %cst_90 = arith.constant 0.000000e+00 : f32
    %153 = vector.broadcast %cst_90 : f32 to vector<32x8xf32>
    %154 = arith.select %36, %152, %153 : vector<32x8xi1>, vector<32x8xf32>
    %c31_i32_91 = arith.constant 31 : i32
    %155 = tpu.dynamic_rotate %151 by %c31_i32_91 dim 0 : vector<32x8xf32>, i32 -> vector<32x8xf32>
    %cst_92 = arith.constant 0.000000e+00 : f32
    %156 = vector.broadcast %cst_92 : f32 to vector<32x8xf32>
    %157 = arith.select %38, %155, %156 : vector<32x8xi1>, vector<32x8xf32>
    %158 = tpu.concatenate %154, %151, %157 in 1 : vector<32x8xf32>, vector<32x8xf32>, vector<32x8xf32> -> vector<32x24xf32>
    %159 = arith.truncf %158 : vector<32x24xf32> to vector<32x24xbf16>
    %c4 = arith.constant 4 : index
    %c0_93 = arith.constant 0 : index
    %c0_94 = arith.constant 0 : index
    %160 = vector.load %arg6[%c4, %c0_93, %c0_94] : memref<7x24x8xbf16, #tpu.memory_space<vmem>>, vector<1x24x8xbf16>
    %161 = vector.shape_cast %160 : vector<1x24x8xbf16> to vector<24x8xbf16>
    %cst_95 = arith.constant dense<0.000000e+00> : vector<32x8xf32>
    %162 = tpu.matmul %159, %161, %cst_95 {dimension_numbers = #tpu.dot_dimension_numbers<[1], [0], [0], [1], [0, 0, 1, 1], [], []>} : vector<32x24xbf16>, vector<24x8xbf16>, vector<32x8xf32> -> vector<32x8xf32>
    %c4_96 = arith.constant 4 : index
    %c0_97 = arith.constant 0 : index
    %c0_98 = arith.constant 0 : index
    %163 = vector.load %arg7[%c4_96, %c0_97, %c0_98] : memref<7x1x8xf32, #tpu.memory_space<vmem>>, vector<1x1x8xf32>
    %164 = vector.shape_cast %163 : vector<1x1x8xf32> to vector<1x8xf32>
    %165 = vector.broadcast %164 : vector<1x8xf32> to vector<32x8xf32>
    %166 = arith.addf %162, %165 : vector<32x8xf32>
    %cst_99 = arith.constant 0.000000e+00 : f32
    %167 = vector.broadcast %cst_99 : f32 to vector<32x8xf32>
    %168 = arith.maximumf %166, %167 : vector<32x8xf32>
    %c4_100 = arith.constant 4 : index
    %c0_101 = arith.constant 0 : index
    %c0_102 = arith.constant 0 : index
    %169 = vector.load %arg8[%c4_100, %c0_101, %c0_102] : memref<7x1x8xf32, #tpu.memory_space<vmem>>, vector<1x1x8xf32>
    %170 = vector.shape_cast %169 : vector<1x1x8xf32> to vector<1x8xf32>
    %171 = vector.broadcast %170 : vector<1x8xf32> to vector<32x8xf32>
    %172 = arith.mulf %168, %171 : vector<32x8xf32>
    %c4_103 = arith.constant 4 : index
    %c0_104 = arith.constant 0 : index
    %c0_105 = arith.constant 0 : index
    %173 = vector.load %arg9[%c4_103, %c0_104, %c0_105] : memref<7x1x8xf32, #tpu.memory_space<vmem>>, vector<1x1x8xf32>
    %174 = vector.shape_cast %173 : vector<1x1x8xf32> to vector<1x8xf32>
    %175 = vector.broadcast %174 : vector<1x8xf32> to vector<32x8xf32>
    %176 = arith.addf %172, %175 : vector<32x8xf32>
    %c0_106 = arith.constant 0 : index
    %c32 = arith.constant 32 : index
    %177 = vector.load %arg19[%c0_106, %c32] : memref<32x64xf32, #tpu.memory_space<vmem>>, vector<32x8xf32>
    tpu.vector_store %arg19[%c0_106, %c32], %176 {strides = array<i32>} : memref<32x64xf32, #tpu.memory_space<vmem>>, vector<32x8xf32>,
    %178 = vector.extract_strided_slice %15 {offsets = [0, 40], sizes = [32, 8], strides = [1, 1]} : vector<32x64xf32> to vector<32x8xf32>
    %179 = arith.addf %176, %178 : vector<32x8xf32>
    %c1_i32_107 = arith.constant 1 : i32
    %180 = tpu.dynamic_rotate %179 by %c1_i32_107 dim 0 : vector<32x8xf32>, i32 -> vector<32x8xf32>
    %cst_108 = arith.constant 0.000000e+00 : f32
    %181 = vector.broadcast %cst_108 : f32 to vector<32x8xf32>
    %182 = arith.select %36, %180, %181 : vector<32x8xi1>, vector<32x8xf32>
    %c31_i32_109 = arith.constant 31 : i32
    %183 = tpu.dynamic_rotate %179 by %c31_i32_109 dim 0 : vector<32x8xf32>, i32 -> vector<32x8xf32>
    %cst_110 = arith.constant 0.000000e+00 : f32
    %184 = vector.broadcast %cst_110 : f32 to vector<32x8xf32>
    %185 = arith.select %38, %183, %184 : vector<32x8xi1>, vector<32x8xf32>
    %186 = tpu.concatenate %182, %179, %185 in 1 : vector<32x8xf32>, vector<32x8xf32>, vector<32x8xf32> -> vector<32x24xf32>
    %187 = arith.truncf %186 : vector<32x24xf32> to vector<32x24xbf16>
    %c5 = arith.constant 5 : index
    %c0_111 = arith.constant 0 : index
    %c0_112 = arith.constant 0 : index
    %188 = vector.load %arg6[%c5, %c0_111, %c0_112] : memref<7x24x8xbf16, #tpu.memory_space<vmem>>, vector<1x24x8xbf16>
    %189 = vector.shape_cast %188 : vector<1x24x8xbf16> to vector<24x8xbf16>
    %cst_113 = arith.constant dense<0.000000e+00> : vector<32x8xf32>
    %190 = tpu.matmul %187, %189, %cst_113 {dimension_numbers = #tpu.dot_dimension_numbers<[1], [0], [0], [1], [0, 0, 1, 1], [], []>} : vector<32x24xbf16>, vector<24x8xbf16>, vector<32x8xf32> -> vector<32x8xf32>
    %c5_114 = arith.constant 5 : index
    %c0_115 = arith.constant 0 : index
    %c0_116 = arith.constant 0 : index
    %191 = vector.load %arg7[%c5_114, %c0_115, %c0_116] : memref<7x1x8xf32, #tpu.memory_space<vmem>>, vector<1x1x8xf32>
    %192 = vector.shape_cast %191 : vector<1x1x8xf32> to vector<1x8xf32>
    %193 = vector.broadcast %192 : vector<1x8xf32> to vector<32x8xf32>
    %194 = arith.addf %190, %193 : vector<32x8xf32>
    %cst_117 = arith.constant 0.000000e+00 : f32
    %195 = vector.broadcast %cst_117 : f32 to vector<32x8xf32>
    %196 = arith.maximumf %194, %195 : vector<32x8xf32>
    %c5_118 = arith.constant 5 : index
    %c0_119 = arith.constant 0 : index
    %c0_120 = arith.constant 0 : index
    %197 = vector.load %arg8[%c5_118, %c0_119, %c0_120] : memref<7x1x8xf32, #tpu.memory_space<vmem>>, vector<1x1x8xf32>
    %198 = vector.shape_cast %197 : vector<1x1x8xf32> to vector<1x8xf32>
    %199 = vector.broadcast %198 : vector<1x8xf32> to vector<32x8xf32>
    %200 = arith.mulf %196, %199 : vector<32x8xf32>
    %c5_121 = arith.constant 5 : index
    %c0_122 = arith.constant 0 : index
    %c0_123 = arith.constant 0 : index
    %201 = vector.load %arg9[%c5_121, %c0_122, %c0_123] : memref<7x1x8xf32, #tpu.memory_space<vmem>>, vector<1x1x8xf32>
    %202 = vector.shape_cast %201 : vector<1x1x8xf32> to vector<1x8xf32>
    %203 = vector.broadcast %202 : vector<1x8xf32> to vector<32x8xf32>
    %204 = arith.addf %200, %203 : vector<32x8xf32>
    %c0_124 = arith.constant 0 : index
    %c40 = arith.constant 40 : index
    %205 = vector.load %arg19[%c0_124, %c40] : memref<32x64xf32, #tpu.memory_space<vmem>>, vector<32x8xf32>
    tpu.vector_store %arg19[%c0_124, %c40], %204 {strides = array<i32>} : memref<32x64xf32, #tpu.memory_space<vmem>>, vector<32x8xf32>,
    %206 = vector.extract_strided_slice %15 {offsets = [0, 48], sizes = [32, 8], strides = [1, 1]} : vector<32x64xf32> to vector<32x8xf32>
    %207 = arith.addf %204, %206 : vector<32x8xf32>
    %c1_i32_125 = arith.constant 1 : i32
    %208 = tpu.dynamic_rotate %207 by %c1_i32_125 dim 0 : vector<32x8xf32>, i32 -> vector<32x8xf32>
    %cst_126 = arith.constant 0.000000e+00 : f32
    %209 = vector.broadcast %cst_126 : f32 to vector<32x8xf32>
    %210 = arith.select %36, %208, %209 : vector<32x8xi1>, vector<32x8xf32>
    %c31_i32_127 = arith.constant 31 : i32
    %211 = tpu.dynamic_rotate %207 by %c31_i32_127 dim 0 : vector<32x8xf32>, i32 -> vector<32x8xf32>
    %cst_128 = arith.constant 0.000000e+00 : f32
    %212 = vector.broadcast %cst_128 : f32 to vector<32x8xf32>
    %213 = arith.select %38, %211, %212 : vector<32x8xi1>, vector<32x8xf32>
    %214 = tpu.concatenate %210, %207, %213 in 1 : vector<32x8xf32>, vector<32x8xf32>, vector<32x8xf32> -> vector<32x24xf32>
    %215 = arith.truncf %214 : vector<32x24xf32> to vector<32x24xbf16>
    %c6 = arith.constant 6 : index
    %c0_129 = arith.constant 0 : index
    %c0_130 = arith.constant 0 : index
    %216 = vector.load %arg6[%c6, %c0_129, %c0_130] : memref<7x24x8xbf16, #tpu.memory_space<vmem>>, vector<1x24x8xbf16>
    %217 = vector.shape_cast %216 : vector<1x24x8xbf16> to vector<24x8xbf16>
    %cst_131 = arith.constant dense<0.000000e+00> : vector<32x8xf32>
    %218 = tpu.matmul %215, %217, %cst_131 {dimension_numbers = #tpu.dot_dimension_numbers<[1], [0], [0], [1], [0, 0, 1, 1], [], []>} : vector<32x24xbf16>, vector<24x8xbf16>, vector<32x8xf32> -> vector<32x8xf32>
    %c6_132 = arith.constant 6 : index
    %c0_133 = arith.constant 0 : index
    %c0_134 = arith.constant 0 : index
    %219 = vector.load %arg7[%c6_132, %c0_133, %c0_134] : memref<7x1x8xf32, #tpu.memory_space<vmem>>, vector<1x1x8xf32>
    %220 = vector.shape_cast %219 : vector<1x1x8xf32> to vector<1x8xf32>
    %221 = vector.broadcast %220 : vector<1x8xf32> to vector<32x8xf32>
    %222 = arith.addf %218, %221 : vector<32x8xf32>
    %cst_135 = arith.constant 0.000000e+00 : f32
    %223 = vector.broadcast %cst_135 : f32 to vector<32x8xf32>
    %224 = arith.maximumf %222, %223 : vector<32x8xf32>
    %c6_136 = arith.constant 6 : index
    %c0_137 = arith.constant 0 : index
    %c0_138 = arith.constant 0 : index
    %225 = vector.load %arg8[%c6_136, %c0_137, %c0_138] : memref<7x1x8xf32, #tpu.memory_space<vmem>>, vector<1x1x8xf32>
    %226 = vector.shape_cast %225 : vector<1x1x8xf32> to vector<1x8xf32>
    %227 = vector.broadcast %226 : vector<1x8xf32> to vector<32x8xf32>
    %228 = arith.mulf %224, %227 : vector<32x8xf32>
    %c6_139 = arith.constant 6 : index
    %c0_140 = arith.constant 0 : index
    %c0_141 = arith.constant 0 : index
    %229 = vector.load %arg9[%c6_139, %c0_140, %c0_141] : memref<7x1x8xf32, #tpu.memory_space<vmem>>, vector<1x1x8xf32>
    %230 = vector.shape_cast %229 : vector<1x1x8xf32> to vector<1x8xf32>
    %231 = vector.broadcast %230 : vector<1x8xf32> to vector<32x8xf32>
    %232 = arith.addf %228, %231 : vector<32x8xf32>
    %c0_142 = arith.constant 0 : index
    %c48 = arith.constant 48 : index
    %233 = vector.load %arg19[%c0_142, %c48] : memref<32x64xf32, #tpu.memory_space<vmem>>, vector<32x8xf32>
    tpu.vector_store %arg19[%c0_142, %c48], %232 {strides = array<i32>} : memref<32x64xf32, #tpu.memory_space<vmem>>, vector<32x8xf32>,
    %c0_143 = arith.constant 0 : index
    %c0_144 = arith.constant 0 : index
    %234 = vector.load %arg19[%c0_143, %c0_144] : memref<32x64xf32, #tpu.memory_space<vmem>>, vector<32x64xf32>
    %235 = arith.truncf %234 : vector<32x64xf32> to vector<32x64xbf16>
    %c0_145 = arith.constant 0 : index
    %c0_146 = arith.constant 0 : index
    %236 = vector.load %arg10[%c0_145, %c0_146] : memref<64x64xbf16, #tpu.memory_space<vmem>>, vector<64x64xbf16>
    %cst_147 = arith.constant dense<0.000000e+00> : vector<32x64xf32>
    %237 = tpu.matmul %235, %236, %cst_147 {dimension_numbers = #tpu.dot_dimension_numbers<[1], [0], [0], [1], [0, 0, 1, 1], [], []>} : vector<32x64xbf16>, vector<64x64xbf16>, vector<32x64xf32> -> vector<32x64xf32>
    %c0_148 = arith.constant 0 : index
    %c0_149 = arith.constant 0 : index
    %238 = vector.load %arg11[%c0_148, %c0_149] : memref<1x64xf32, #tpu.memory_space<vmem>>, vector<1x64xf32>
    %239 = vector.broadcast %238 : vector<1x64xf32> to vector<32x64xf32>
    %240 = arith.addf %237, %239 : vector<32x64xf32>
    %cst_150 = arith.constant 0.000000e+00 : f32
    %241 = vector.broadcast %cst_150 : f32 to vector<32x64xf32>
    %242 = arith.maximumf %240, %241 : vector<32x64xf32>
    %c0_151 = arith.constant 0 : index
    %c0_152 = arith.constant 0 : index
    %243 = vector.load %arg12[%c0_151, %c0_152] : memref<1x64xf32, #tpu.memory_space<vmem>>, vector<1x64xf32>
    %244 = vector.broadcast %243 : vector<1x64xf32> to vector<32x64xf32>
    %245 = arith.mulf %242, %244 : vector<32x64xf32>
    %c0_153 = arith.constant 0 : index
    %c0_154 = arith.constant 0 : index
    %246 = vector.load %arg13[%c0_153, %c0_154] : memref<1x64xf32, #tpu.memory_space<vmem>>, vector<1x64xf32>
    %247 = vector.broadcast %246 : vector<1x64xf32> to vector<32x64xf32>
    %248 = arith.addf %245, %247 : vector<32x64xf32>
    %249 = vector.shape_cast %248 : vector<32x64xf32> to vector<2x16x64xf32>
    %cst_155 = arith.constant dense<0.000000e+00> : vector<2x64xf32>
    %250 = vector.multi_reduction <add>, %249, %cst_155 [1] : vector<2x16x64xf32> to vector<2x64xf32>
    %cst_156 = arith.constant 1.600000e+01 : f32
    %251 = vector.broadcast %cst_156 : f32 to vector<2x64xf32>
    %252 = arith.divf %250, %251 : vector<2x64xf32>
    %253 = arith.truncf %252 : vector<2x64xf32> to vector<2x64xbf16>
    %c0_157 = arith.constant 0 : index
    %c0_158 = arith.constant 0 : index
    %254 = vector.load %arg14[%c0_157, %c0_158] : memref<64x128xbf16, #tpu.memory_space<vmem>>, vector<64x128xbf16>
    %cst_159 = arith.constant dense<0.000000e+00> : vector<2x128xf32>
    %255 = tpu.matmul %253, %254, %cst_159 {dimension_numbers = #tpu.dot_dimension_numbers<[1], [0], [0], [1], [0, 0, 1, 1], [], []>} : vector<2x64xbf16>, vector<64x128xbf16>, vector<2x128xf32> -> vector<2x128xf32>
    %c0_160 = arith.constant 0 : index
    %c0_161 = arith.constant 0 : index
    %256 = vector.load %arg15[%c0_160, %c0_161] : memref<1x128xf32, #tpu.memory_space<vmem>>, vector<1x128xf32>
    %257 = vector.broadcast %256 : vector<1x128xf32> to vector<2x128xf32>
    %258 = arith.addf %255, %257 : vector<2x128xf32>
    %cst_162 = arith.constant 0.000000e+00 : f32
    %259 = vector.broadcast %cst_162 : f32 to vector<2x128xf32>
    %260 = arith.maximumf %258, %259 : vector<2x128xf32>
    %261 = arith.truncf %260 : vector<2x128xf32> to vector<2x128xbf16>
    %c0_163 = arith.constant 0 : index
    %c0_164 = arith.constant 0 : index
    %262 = vector.load %arg16[%c0_163, %c0_164] : memref<128x64xbf16, #tpu.memory_space<vmem>>, vector<128x64xbf16>
    %cst_165 = arith.constant dense<0.000000e+00> : vector<2x64xf32>
    %263 = tpu.matmul %261, %262, %cst_165 {dimension_numbers = #tpu.dot_dimension_numbers<[1], [0], [0], [1], [0, 0, 1, 1], [], []>} : vector<2x128xbf16>, vector<128x64xbf16>, vector<2x64xf32> -> vector<2x64xf32>
    %c0_166 = arith.constant 0 : index
    %c0_167 = arith.constant 0 : index
    %264 = vector.load %arg17[%c0_166, %c0_167] : memref<1x64xf32, #tpu.memory_space<vmem>>, vector<1x64xf32>
    %265 = vector.broadcast %264 : vector<1x64xf32> to vector<2x64xf32>
    %266 = arith.addf %263, %265 : vector<2x64xf32>
    %267 = arith.negf %266 : vector<2x64xf32>
    %268 = math.exp %267 : vector<2x64xf32>
    %cst_168 = arith.constant 1.000000e+00 : f32
    %269 = vector.broadcast %cst_168 : f32 to vector<2x64xf32>
    %270 = arith.addf %269, %268 : vector<2x64xf32>
    %271 = arith.divf %269, %270 : vector<2x64xf32>
    %272 = vector.shape_cast %271 : vector<2x64xf32> to vector<2x1x64xf32>
    %273 = vector.broadcast %272 : vector<2x1x64xf32> to vector<2x16x64xf32>
    %274 = arith.mulf %249, %273 : vector<2x16x64xf32>
    %275 = arith.addf %274, %0 : vector<2x16x64xf32>
    %c0_169 = arith.constant 0 : index
    %c0_170 = arith.constant 0 : index
    %c0_171 = arith.constant 0 : index
    %276 = vector.load %arg18[%c0_169, %c0_170, %c0_171] : memref<2x16x64xf32, #tpu.memory_space<vmem>>, vector<2x16x64xf32>
    tpu.vector_store %arg18[%c0_169, %c0_170, %c0_171], %275 {strides = array<i32>} : memref<2x16x64xf32, #tpu.memory_space<vmem>>, vector<2x16x64xf32>,
    return
  }
  func.func @transform_0(%arg0: i32) -> (i32, i32, i32) {
    %c0_i32 = arith.constant 0 : i32
    %c0_i32_0 = arith.constant 0 : i32
    %c0_i32_1 = arith.constant 0 : i32
    return %arg0, %c0_i32, %c0_i32_0 : i32, i32, i32
  }
  func.func @transform_1(%arg0: i32) -> (i32, i32) {
    %c0_i32 = arith.constant 0 : i32
    %c0_i32_0 = arith.constant 0 : i32
    %c0_i32_1 = arith.constant 0 : i32
    return %c0_i32, %c0_i32_0 : i32, i32
  }
  func.func @transform_2(%arg0: i32) -> (i32, i32) {
    %c0_i32 = arith.constant 0 : i32
    %c0_i32_0 = arith.constant 0 : i32
    %c0_i32_1 = arith.constant 0 : i32
    return %c0_i32, %c0_i32_0 : i32, i32
  }
  func.func @transform_3(%arg0: i32) -> (i32, i32) {
    %c0_i32 = arith.constant 0 : i32
    %c0_i32_0 = arith.constant 0 : i32
    %c0_i32_1 = arith.constant 0 : i32
    return %c0_i32, %c0_i32_0 : i32, i32
  }
  func.func @transform_4(%arg0: i32) -> (i32, i32) {
    %c0_i32 = arith.constant 0 : i32
    %c0_i32_0 = arith.constant 0 : i32
    %c0_i32_1 = arith.constant 0 : i32
    return %c0_i32, %c0_i32_0 : i32, i32
  }
  func.func @transform_5(%arg0: i32) -> (i32, i32, i32) {
    %c0_i32 = arith.constant 0 : i32
    %c0_i32_0 = arith.constant 0 : i32
    %c0_i32_1 = arith.constant 0 : i32
    %c0_i32_2 = arith.constant 0 : i32
    return %c0_i32, %c0_i32_0, %c0_i32_1 : i32, i32, i32
  }
  func.func @transform_6(%arg0: i32) -> (i32, i32, i32) {
    %c0_i32 = arith.constant 0 : i32
    %c0_i32_0 = arith.constant 0 : i32
    %c0_i32_1 = arith.constant 0 : i32
    %c0_i32_2 = arith.constant 0 : i32
    return %c0_i32, %c0_i32_0, %c0_i32_1 : i32, i32, i32
  }
  func.func @transform_7(%arg0: i32) -> (i32, i32, i32) {
    %c0_i32 = arith.constant 0 : i32
    %c0_i32_0 = arith.constant 0 : i32
    %c0_i32_1 = arith.constant 0 : i32
    %c0_i32_2 = arith.constant 0 : i32
    return %c0_i32, %c0_i32_0, %c0_i32_1 : i32, i32, i32
  }
  func.func @transform_8(%arg0: i32) -> (i32, i32, i32) {
    %c0_i32 = arith.constant 0 : i32
    %c0_i32_0 = arith.constant 0 : i32
    %c0_i32_1 = arith.constant 0 : i32
    %c0_i32_2 = arith.constant 0 : i32
    return %c0_i32, %c0_i32_0, %c0_i32_1 : i32, i32, i32
  }
  func.func @transform_9(%arg0: i32) -> (i32, i32) {
    %c0_i32 = arith.constant 0 : i32
    %c0_i32_0 = arith.constant 0 : i32
    %c0_i32_1 = arith.constant 0 : i32
    return %c0_i32, %c0_i32_0 : i32, i32
  }
  func.func @transform_10(%arg0: i32) -> (i32, i32) {
    %c0_i32 = arith.constant 0 : i32
    %c0_i32_0 = arith.constant 0 : i32
    %c0_i32_1 = arith.constant 0 : i32
    return %c0_i32, %c0_i32_0 : i32, i32
  }
  func.func @transform_11(%arg0: i32) -> (i32, i32) {
    %c0_i32 = arith.constant 0 : i32
    %c0_i32_0 = arith.constant 0 : i32
    %c0_i32_1 = arith.constant 0 : i32
    return %c0_i32, %c0_i32_0 : i32, i32
  }
  func.func @transform_12(%arg0: i32) -> (i32, i32) {
    %c0_i32 = arith.constant 0 : i32
    %c0_i32_0 = arith.constant 0 : i32
    %c0_i32_1 = arith.constant 0 : i32
    return %c0_i32, %c0_i32_0 : i32, i32
  }
  func.func @transform_13(%arg0: i32) -> (i32, i32) {
    %c0_i32 = arith.constant 0 : i32
    %c0_i32_0 = arith.constant 0 : i32
    %c0_i32_1 = arith.constant 0 : i32
    return %c0_i32, %c0_i32_0 : i32, i32
  }
  func.func @transform_14(%arg0: i32) -> (i32, i32) {
    %c0_i32 = arith.constant 0 : i32
    %c0_i32_0 = arith.constant 0 : i32
    %c0_i32_1 = arith.constant 0 : i32
    return %c0_i32, %c0_i32_0 : i32, i32
  }
  func.func @transform_15(%arg0: i32) -> (i32, i32) {
    %c0_i32 = arith.constant 0 : i32
    %c0_i32_0 = arith.constant 0 : i32
    %c0_i32_1 = arith.constant 0 : i32
    return %c0_i32, %c0_i32_0 : i32, i32
  }
  func.func @transform_16(%arg0: i32) -> (i32, i32) {
    %c0_i32 = arith.constant 0 : i32
    %c0_i32_0 = arith.constant 0 : i32
    %c0_i32_1 = arith.constant 0 : i32
    return %c0_i32, %c0_i32_0 : i32, i32
  }
  func.func @transform_17(%arg0: i32) -> (i32, i32, i32) {
    %c0_i32 = arith.constant 0 : i32
    %c0_i32_0 = arith.constant 0 : i32
    %c0_i32_1 = arith.constant 0 : i32
    return %arg0, %c0_i32, %c0_i32_0 : i32, i32, i32
  }
}

</mosaic_0001>

<bundles_post_ra>
// kernel: tpu_custom_call.1
= control target key start
LH: loop header
LB: loop body
LE: loop exit
PB: predicated region body
PF: predicated region fallthrough
CT: control target
= control target key end

     0   :  { %s3441_s0 = inlined_call_operand.vmem [shape: f32[2,16,64], index: 0, kind: input, shape index: {}]   ;;  %s3442_s1 = inlined_call_operand.vmem [shape: bf16[64,64], index: 1, kind: input, shape index: {}]   ;;  %s3443_s2 = inlined_call_operand.vmem [shape: f32[1,64], index: 2, kind: input, shape index: {}]   ;;  %s3444_s3 = inlined_call_operand.vmem [shape: f32[1,64], index: 3, kind: input, shape index: {}]   ;;  %s3445_s4 = inlined_call_operand.vmem [shape: f32[1,64], index: 4, kind: input, shape index: {}]   ;;  %s3446_s5 = inlined_call_operand.vmem [shape: bf16[7,24,8], index: 5, kind: input, shape index: {}]   ;;  %s3447_s6 = inlined_call_operand.vmem [shape: f32[7,1,8], index: 6, kind: input, shape index: {}]   ;;  %s3448_s7 = inlined_call_operand.vmem [shape: f32[7,1,8], index: 7, kind: input, shape index: {}]   ;;  %s3449_s8 = inlined_call_operand.vmem [shape: f32[7,1,8], index: 8, kind: input, shape index: {}]   ;;  %s3450_s9 = inlined_call_operand.vmem [shape: bf16[64,64], index: 9, kind: input, shape index: {}]   ;;  %s3451_s10 = inlined_call_operand.vmem [shape: f32[1,64], index: 10, kind: input, shape index: {}]   ;;  %s3452_s11 = inlined_call_operand.vmem [shape: f32[1,64], index: 11, kind: input, shape index: {}]   ;;  %s3453_s12 = inlined_call_operand.vmem [shape: f32[1,64], index: 12, kind: input, shape index: {}]   ;;  %s3454_s13 = inlined_call_operand.vmem [shape: bf16[64,128], index: 13, kind: input, shape index: {}]   ;;  %s3455_s14 = inlined_call_operand.vmem [shape: f32[1,128], index: 14, kind: input, shape index: {}]   ;;  %s3456_s15 = inlined_call_operand.vmem [shape: bf16[128,64], index: 15, kind: input, shape index: {}]   ;;  %s3457_s16 = inlined_call_operand.vmem [shape: f32[1,64], index: 16, kind: input, shape index: {}]   ;;  %s3458_s17 = inlined_call_operand.hbm [shape: f32[2,16,64], index: 17, kind: output, shape index: {}]  }
   0x1   :  { %3461 = sst [smem:[#allocation6_spill]] %s3441_s0 }
   0x2   :  { %3462 = sst [smem:[#allocation7_spill]] %s3442_s1 }
   0x3   :  { %s3463_s26 = sld [smem:[#allocation7_spill]]  ;;  %s3464_s19 = sld [smem:[#allocation6_spill]]  ;;  %vm103_vm0 = vcmask 523264  }
   0x9   :  { %v2557_v0 = vld [vmem:[%s3463_s26] sm:$0xff]   ;;  %v2558_v1 = vld [vmem:[%s3463_s26 + $0x8] sm:$0xff]   ;;  %v2559_v2 = vld [vmem:[%s3463_s26 + $0x10] sm:$0xff]  }
   0xa   :  { %2281 = vmatprep.subr.bf16.mxu0 %v2557_v0  ;;  %v58_v3 = vld [vmem:[%s3464_s19] sm:$0xff]  ;;  %v59_v4 = vld [vmem:[%s3464_s19 + $0x8] sm:$0xff]  ;;  %v2560_v6 = vld [vmem:[%s3463_s26 + $0x18] sm:$0xff]  }
   0xb   :  { %2282 = vmatpush3.bf16.msra.mxu0 %v2557_v0  ;;  %v62_v5 = vpack.c.bf16 %v59_v4, %v58_v3  ;;  %v60_v7 = vld [vmem:[%s3464_s19 + $0x10] sm:$0xff]  ;;  %v61_v8 = vld [vmem:[%s3464_s19 + $0x18] sm:$0xff] }
   0xc   :  { %2283 = vmatprep.subr.bf16.mxu0 %v2558_v1  ;;  %v63_v9 = vpack.c.bf16 %v61_v8, %v60_v7 }
   0xd   :  { %2289 = vmatprep.mubr.msk.bf16.mxu0 %vm103_vm0, %v62_v5 }
   0xf   :  { %2284 = vmatpush3.bf16.msra.mxu0 %v2558_v1 }
  0x10   :  { %2285 = vmatprep.subr.bf16.mxu0 %v2559_v2 }
  0x13   :  { %2286 = vmatpush3.bf16.msra.mxu0 %v2559_v2 }
  0x14   :  { %2287 = vmatprep.subr.bf16.mxu0 %v2560_v6 }
  0x17   :  { %2288 = vmatpush3.bf16.msra.mxu0 %v2560_v6 }
  0x1a   :  { %2290 = vmatmul.mubr.msk.bf16.vlgmr.msra.gmra.mrb[0].mxu0 %vm103_vm0, %v63_v9 }
  0x1b   :  { %22 = vsyncpa [#allocation4], 0  ;;  %v190_v10 = vlaneseq  ;;  %v2108_v11 = vld [vmem:[%s3443_s2] ss:$0 sm:$0xff]  ;;  %vm185_vm1 = vcmask 523712   ;;  %vm347_vm2 = vcmask 1043456  }
  0x1c   :  { %v2115_v16 = vld [vmem:[%s3444_s3] ss:$0 sm:$0xff]  ;;  %v2562_v38 = vld [vmem:[%s3446_s5 + $0x8] ss:$0 sps:$4 sm:$0xff]   ;;  %s2623_s20 = smov 8   ;;  %s2624_s21 = smov 16  }
  0x1d   :  { %v2759_v13 = vshrl.u32 %v190_v10, 7  ;;  %v2116_v22 = vld [vmem:[%s3445_s4] ss:$0 sm:$0xff]  ;;  %v349_v43 = vsel %vm347_vm2, %v2562_v38, 0  ;;  %s2625_s22 = smov 120   ;;  %vm309_vm8 = vcmask 64512  }
  0x1e   :  { %v2561_v28 = vld [vmem:[%s3446_s5] sm:$0xff]   ;;  %vm314_vm10 = vcmask 130048   ;;  %vm340_vm11 = vcmask 195584   ;;  %s2626_s2 = smov 112   ;;  %s2627_s29 = smov 104   ;;  %vm635_vm12 = vcmask 130112  }
  0x1f   :  { %v192_v25 = vadd.s32 8, %v2759_v13  ;;  %v194_v31 = vadd.s32 24, %v2759_v13  ;;  %2293 = vmatprep.subr.bf16.mxu0 %v2561_v28  ;;  %vm268_vm3 = vcmp.lt.s32.totalorder %v2759_v13, 7  ;;  %v193_v58 = vadd.s32 16, %v2759_v13  ;;  %s2628_s25 = smov 96   ;;  %s2629_s4 = smov 88  }
  0x20   :  { %2294 = vmatpush3.bf16.msra.mxu0 %v2561_v28  ;;  %v199_v59 = vand.u32 15, %v2759_v13  ;;  %vm255_vm6 = vcmp.lt.s32.totalorder %v2759_v13, 1  ;;  %s2630_s18 = smov 80   ;;  %s2632_s28 = smov 32   ;;  %vm845_vm13 = vcmask 195712   ;;  %vm1055_vm14 = vcmask 261312  }
  0x21   :  { %v206_v36 = vand.u32 15, %v192_v25  ;;  %v220_v41 = vand.u32 15, %v194_v31  ;;  %2393 = vmatprep.subr.msk.bf16.mxu0 %vm347_vm2, %v2562_v38  ;;  %v213_v0 = vand.u32 15, %v193_v58  ;;  %vm1265_vm15 = vcmask 326912  }
  0x22   :  { %vm2836_vm7 = vcmp.ge.s32.totalorder %v199_v59, 1 }
  0x23   :  { %vm2796_vm4 = vcmp.lt.s32.totalorder %v206_v36, 15  ;;  %vm2809_vm5 = vcmp.lt.s32.totalorder %v220_v41, 15  ;;  %vm2845_vm9 = vcmp.ge.s32.totalorder %v213_v0, 1 }
  0x24   :  { %2296 = vmatpush3.bf16.msra.mxu0 %v349_v43 }
  0xed   :  { %v2291_v12 = vpop.f32.mrb[0].mxu0 }
  0xee   :  { %v153_v14 = vadd.f32 %v2291_v12, %v2108_v11  ;;  %v144_v15 = vpop.f32.mrb[1].mxu0 }
  0xef   :  { %v145_v17 = vadd.f32 %v2108_v11, %v144_v15  ;;  %v2292_v18 = vpop.f32.mrb[2].mxu0 }
  0xf0   :  { %v161_v19 = vmax.f32 %v153_v14, 0.0  ;;  %v156_v20 = vadd.f32 %v2292_v18, %v2108_v11  ;;  %v147_v21 = vpop.f32.mrb[3].mxu0 }
  0xf1   :  { %v159_v23 = vmax.f32 %v145_v17, 0.0  ;;  %v148_v24 = vadd.f32 %v2108_v11, %v147_v21 }
  0xf2   :  { %v172_v26 = vmul.f32 %v2115_v16, %v161_v19  ;;  %v162_v27 = vmax.f32 %v156_v20, 0.0 }
  0xf3   :  { %v170_v29 = vmul.f32 %v2115_v16, %v159_v23  ;;  %v160_v30 = vmax.f32 %v148_v24, 0.0 }
  0xf4   :  { %v2772_v32 = vadd.f32 %v2116_v22, %v172_v26  ;;  %v173_v33 = vmul.f32 %v2115_v16, %v162_v27 }
  0xf5   :  { %v2774_v34 = vadd.f32 %v2116_v22, %v170_v29  ;;  %v171_v35 = vmul.f32 %v2115_v16, %v160_v30 }
  0xf6   :  { %v2776_v37 = vadd.f32 %v2116_v22, %v173_v33  ;;  %188 = vst.msk [vmem:[#allocation2 + $0x10] sm:$0xff] %vm185_vm1, %v2772_v32  ;;  %v266_v47 = vrot.slane %v2772_v32, 1  ;;  %v253_v5 = vrot.slane %v2772_v32, 7  ;;  %v2117_v33 = vld [vmem:[%s3447_s6] ss:$0 sm:$0xff] }
  0xf7   :  { %v2783_v39 = vadd.f32 %v2116_v22, %v171_v35  ;;  %v264_v40 = vrot.slane %v2774_v34, 1  ;;  %186 = vst.msk [vmem:[#allocation2] sm:$0xff] %vm185_vm1, %v2774_v34  ;;  %v251_v61 = vrot.slane %v2774_v34, 7 }
  0xf8   :  { %v267_v42 = vrot.slane %v2776_v37, 1  ;;  %189 = vst.msk [vmem:[#allocation2 + $0x18] sm:$0xff] %vm185_vm1, %v2776_v37  ;;  %v2422_v53 = vpack.i.bf16 %v2776_v37, %v2772_v32  ;;  %v254_v60 = vrot.slane %v2776_v37, 7 }
  0xf9   :  { %v2417_v44 = vpack.i.bf16 %v2783_v39, %v2774_v34  ;;  %v265_v46 = vrot.slane %v2783_v39, 1  ;;  %187 = vst.msk [vmem:[#allocation2 + $0x8] sm:$0xff] %vm185_vm1, %v2783_v39  ;;  %v252_v62 = vrot.slane %v2783_v39, 7  ;;  %vm1475_vm1 = vcmask 392512  }
  0xfa   :  { %v272_v51 = vsel %vm268_vm3, %v267_v42, %v264_v40  ;;  %v269_v55 = vsel %vm268_vm3, %v266_v47, %v267_v42  ;;  %v259_v4 = vsel %vm255_vm6, %v254_v60, %v251_v61  ;;  %v256_v23 = vsel %vm255_vm6, %v253_v5, %v254_v60 }
  0xfb   :  { %2418 = vrot.lane.b32.xlu0 %v2417_v44, %s2623_s20  ;;  %v270_v48 = vsel %vm268_vm3, %v265_v46, %v266_v47  ;;  %v271_v49 = vsel %vm268_vm3, %v264_v40, %v265_v46  ;;  %v276_v56 = vsel %vm2809_vm5, %v272_v51, 0.0  ;;  %v258_v6 = vsel %vm255_vm6, %v251_v61, %v252_v62  ;;  %v2122_v40 = vld [vmem:[%s3448_s7] ss:$0 sm:$0xff] }
  0xfc   :  { %v274_v52 = vsel %vm2796_vm4, %v270_v48, 0.0  ;;  %v2432_v57 = vpack.i.bf16 %v276_v56, %v269_v55  ;;  %v260_v10 = vsel %vm2836_vm7, %v259_v4, 0.0  ;;  %v257_v11 = vsel %vm255_vm6, %v252_v62, %v253_v5  ;;  %v2564_v62 = vld [vmem:[%s3446_s5 + $0x14] ss:$0 sps:$4 sm:$0xff]  }
  0xfd   :  { %v2427_v54 = vpack.i.bf16 %v274_v52, %v271_v49  ;;  %v262_v24 = vsel %vm2845_vm9, %v257_v11, 0.0  ;;  %v2123_v49 = vld [vmem:[%s3449_s8] ss:$0 sm:$0xff] }
  0xff   :  { %2423 = vrot.lane.b32.xlu0 %v2422_v53, %s2623_s20  ;;  %2428 = vrot.lane.b32.xlu1 %v2427_v54, %s2624_s21  ;;  %v2563_v53 = vld [vmem:[%s3446_s5 + $0xc] sm:$0xff]  }
 0x100   :  { %2301 = vmatprep.subr.bf16.mxu1 %v2563_v53 }
 0x101   :  { %2302 = vmatpush3.bf16.msra.mxu1 %v2563_v53 }
 0x102   :  { %2394 = vmatprep.subr.msk.bf16.mxu1 %vm347_vm2, %v2564_v62 }
 0x103   :  { %432 = vrot.lane.b32.xlu0 %v2783_v39, %s2625_s22  ;;  %2433 = vrot.lane.b32.xlu1 %v2432_v57, %s2624_s21 }
 0x107   :  { %430 = vrot.lane.b32.xlu0 %v2774_v34, %s2625_s22  ;;  %434 = vrot.lane.b32.xlu1 %v2772_v32, %s2625_s22 }
 0x10b   :  { %436 = vrot.lane.b32.xlu1 %v2776_v37, %s2625_s22 }
 0x16d   :  { %v2419_v63 = vpop.permute.xlu0 %2418 }
 0x16e   :  { %v2421_v2 = vunpack.i.h.bf16 %v2419_v63  ;;  %v2420_v3 = vunpack.i.l.bf16 %v2419_v63 }
 0x170   :  { %v310_v15 = vsel %vm309_vm8, %v260_v10, %v2420_v3  ;;  %v311_v16 = vsel %vm309_vm8, %v258_v6, %v2421_v2  ;;  %v540_v6 = vsel %vm347_vm2, %v2564_v62, 0 }
 0x171   :  { %v2424_v8 = vpop.permute.xlu0 %2423  ;;  %v2429_v9 = vpop.permute.xlu1 %2428  ;;  %2304 = vmatpush3.bf16.msra.mxu1 %v540_v6 }
 0x172   :  { %v2431_v12 = vunpack.i.h.bf16 %v2429_v9  ;;  %v2430_v14 = vunpack.i.l.bf16 %v2429_v9  ;;  %v2426_v17 = vunpack.i.h.bf16 %v2424_v8  ;;  %v2425_v18 = vunpack.i.l.bf16 %v2424_v8 }
 0x174   :  { %v315_v19 = vsel %vm314_vm10, %v310_v15, %v2430_v14  ;;  %v316_v20 = vsel %vm314_vm10, %v311_v16, %v2431_v12  ;;  %v313_v27 = vsel %vm309_vm8, %v256_v23, %v2426_v17  ;;  %v312_v28 = vsel %vm309_vm8, %v262_v24, %v2425_v18 }
 0x175   :  { %v319_v21 = vpack.c.bf16 %v316_v20, %v315_v19  ;;  %v2434_v22 = vpop.permute.xlu1 %2433  ;;  %v433_v43 = vpop.permute.xlu0 %432 }
 0x176   :  { %v2436_v25 = vunpack.i.h.bf16 %v2434_v22  ;;  %v2435_v26 = vunpack.i.l.bf16 %v2434_v22 }
 0x177   :  { %2297 = vmatprep.mubr.msk.bf16.mxu0 %vm340_vm11, %v319_v21 }
 0x178   :  { %v318_v29 = vsel %vm314_vm10, %v313_v27, %v2436_v25  ;;  %v317_v30 = vsel %vm314_vm10, %v312_v28, %v2435_v26 }
 0x179   :  { %v320_v31 = vpack.c.bf16 %v318_v29, %v317_v30  ;;  %v435_v48 = vpop.permute.xlu1 %434  ;;  %v431_v63 = vpop.permute.xlu0 %430 }
 0x17b   :  { %2298 = vmatmul.mubr.msk.bf16.vlgmr.msra.gmra.mrb[4].mxu0 %vm340_vm11, %v320_v31 }
 0x17d   :  { %v437_v3 = vpop.permute.xlu1 %436 }
 0x24e   :  { %v2299_v35 = vpop.f32.mrb[4].mxu0 }
 0x24f   :  { %v394_v36 = vadd.f32 %v2299_v35, %v2117_v33  ;;  %v385_v38 = vpop.f32.mrb[5].mxu0 }
 0x250   :  { %v386_v41 = vadd.f32 %v2117_v33, %v385_v38  ;;  %v2300_v42 = vpop.f32.mrb[6].mxu0 }
 0x251   :  { %v402_v44 = vmax.f32 %v394_v36, 0.0  ;;  %v397_v46 = vadd.f32 %v2300_v42, %v2117_v33  ;;  %v388_v47 = vpop.f32.mrb[7].mxu0 }
 0x252   :  { %v400_v51 = vmax.f32 %v386_v41, 0.0  ;;  %v389_v52 = vadd.f32 %v2117_v33, %v388_v47 }
 0x253   :  { %v413_v54 = vmul.f32 %v2122_v40, %v402_v44  ;;  %v403_v55 = vmax.f32 %v397_v46, 0.0 }
 0x254   :  { %v411_v56 = vmul.f32 %v2122_v40, %v400_v51  ;;  %v401_v57 = vmax.f32 %v389_v52, 0.0 }
 0x255   :  { %v424_v58 = vadd.f32 %v2123_v49, %v413_v54  ;;  %v414_v59 = vmul.f32 %v2122_v40, %v403_v55 }
 0x256   :  { %v422_v60 = vadd.f32 %v2123_v49, %v411_v56  ;;  %v412_v61 = vmul.f32 %v2122_v40, %v401_v57 }
 0x257   :  { %v444_v0 = vadd.f32 %v435_v48, %v424_v58  ;;  %v425_v2 = vadd.f32 %v2123_v49, %v414_v59  ;;  %428 = vst.msk [vmem:[#allocation2 + $0x10] sm:$0xff] %vm309_vm8, %v424_v58 }
 0x258   :  { %v442_v4 = vadd.f32 %v431_v63, %v422_v60  ;;  %v423_v5 = vadd.f32 %v2123_v49, %v412_v61  ;;  %426 = vst.msk [vmem:[#allocation2] sm:$0xff] %vm309_vm8, %v422_v60  ;;  %v2128_v63 = vld [vmem:[%s3447_s6 + $0x1] ss:$0 sm:$0xff] }
 0x259   :  { %v445_v8 = vadd.f32 %v437_v3, %v425_v2  ;;  %429 = vst.msk [vmem:[#allocation2 + $0x18] sm:$0xff] %vm309_vm8, %v425_v2  ;;  %v448_v9 = vrot.slane %v444_v0, 7  ;;  %v460_v16 = vrot.slane %v444_v0, 1 }
 0x25a   :  { %v443_v10 = vadd.f32 %v433_v43, %v423_v5  ;;  %v458_v11 = vrot.slane %v442_v4, 1  ;;  %v446_v12 = vrot.slane %v442_v4, 7  ;;  %427 = vst.msk [vmem:[#allocation2 + $0x8] sm:$0xff] %vm309_vm8, %v423_v5 }
 0x25b   :  { %v449_v14 = vrot.slane %v445_v8, 7  ;;  %v2437_v15 = vpack.i.bf16 %v445_v8, %v444_v0  ;;  %v461_v17 = vrot.slane %v445_v8, 1 }
 0x25c   :  { %v447_v18 = vrot.slane %v443_v10, 7  ;;  %v2442_v19 = vpack.i.bf16 %v443_v10, %v442_v4  ;;  %v459_v20 = vrot.slane %v443_v10, 1  ;;  %v2134_v4 = vld [vmem:[%s3448_s7 + $0x1] ss:$0 sm:$0xff] }
 0x25d   :  { %2438 = vrot.lane.b32.xlu1 %v2437_v15, %s2623_s20  ;;  %v462_v21 = vsel %vm268_vm3, %v460_v16, %v461_v17  ;;  %v465_v22 = vsel %vm268_vm3, %v461_v17, %v458_v11  ;;  %v450_v23 = vsel %vm255_vm6, %v448_v9, %v449_v14  ;;  %v453_v24 = vsel %vm255_vm6, %v449_v14, %v446_v12  ;;  %v2136_v14 = vld [vmem:[%s3449_s8 + $0x1] ss:$0 sm:$0xff] }
 0x25e   :  { %2443 = vrot.lane.b32.xlu0 %v2442_v19, %s2623_s20  ;;  %v469_v25 = vsel %vm2809_vm5, %v465_v22, 0.0  ;;  %v463_v26 = vsel %vm268_vm3, %v459_v20, %v460_v16  ;;  %v464_v27 = vsel %vm268_vm3, %v458_v11, %v459_v20  ;;  %v451_v28 = vsel %vm255_vm6, %v447_v18, %v448_v9  ;;  %v2565_v19 = vld [vmem:[%s3446_s5 + $0x18] sm:$0xff]  }
 0x25f   :  { %v2452_v29 = vpack.i.bf16 %v469_v25, %v462_v21  ;;  %v467_v30 = vsel %vm2796_vm4, %v463_v26, 0.0  ;;  %v452_v31 = vsel %vm255_vm6, %v446_v12, %v447_v18  ;;  %v456_v44 = vsel %vm2845_vm9, %v451_v28, 0.0  ;;  %2309 = vmatprep.subr.bf16.mxu0 %v2565_v19 }
 0x260   :  { %v2447_v33 = vpack.i.bf16 %v467_v30, %v464_v27  ;;  %v454_v49 = vsel %vm2836_vm7, %v453_v24, 0.0  ;;  %2310 = vmatpush3.bf16.msra.mxu0 %v2565_v19 }
 0x261   :  { %2453 = vrot.lane.b32.xlu1 %v2452_v29, %s2624_s21  ;;  %v2566_v29 = vld [vmem:[%s3446_s5 + $0x20] ss:$0 sps:$4 sm:$0xff]  }
 0x262   :  { %2448 = vrot.lane.b32.xlu0 %v2447_v33, %s2624_s21  ;;  %2395 = vmatprep.subr.msk.bf16.mxu0 %vm347_vm2, %v2566_v29 }
 0x265   :  { %644 = vrot.lane.b32.xlu1 %v2772_v32, %s2626_s2 }
 0x266   :  { %642 = vrot.lane.b32.xlu0 %v2783_v39, %s2626_s2 }
 0x269   :  { %646 = vrot.lane.b32.xlu1 %v2776_v37, %s2626_s2 }
 0x26a   :  { %640 = vrot.lane.b32.xlu0 %v2774_v34, %s2626_s2 }
 0x2cf   :  { %v2439_v35 = vpop.permute.xlu1 %2438 }
 0x2d0   :  { %v2444_v36 = vpop.permute.xlu0 %2443  ;;  %v2441_v38 = vunpack.i.h.bf16 %v2439_v35  ;;  %v2440_v40 = vunpack.i.l.bf16 %v2439_v35 }
 0x2d1   :  { %v2446_v41 = vunpack.i.h.bf16 %v2444_v36  ;;  %v2445_v42 = vunpack.i.l.bf16 %v2444_v36  ;;  %v750_v36 = vsel %vm347_vm2, %v2566_v29, 0 }
 0x2d2   :  { %v504_v51 = vsel %vm309_vm8, %v456_v44, %v2440_v40  ;;  %v505_v52 = vsel %vm309_vm8, %v450_v23, %v2441_v38  ;;  %2312 = vmatpush3.bf16.msra.mxu0 %v750_v36 }
 0x2d3   :  { %v2454_v43 = vpop.permute.xlu1 %2453  ;;  %v502_v57 = vsel %vm309_vm8, %v454_v49, %v2445_v42  ;;  %v503_v58 = vsel %vm309_vm8, %v452_v31, %v2446_v41 }
 0x2d4   :  { %v2456_v46 = vunpack.i.h.bf16 %v2454_v43  ;;  %v2455_v47 = vunpack.i.l.bf16 %v2454_v43  ;;  %v2449_v48 = vpop.permute.xlu0 %2448 }
 0x2d5   :  { %v2451_v53 = vunpack.i.h.bf16 %v2449_v48  ;;  %v2450_v54 = vunpack.i.l.bf16 %v2449_v48 }
 0x2d6   :  { %v509_v55 = vsel %vm314_vm10, %v505_v52, %v2456_v46  ;;  %v508_v56 = vsel %vm314_vm10, %v504_v51, %v2455_v47 }
 0x2d7   :  { %v511_v59 = vpack.c.bf16 %v509_v55, %v508_v56  ;;  %v506_v60 = vsel %vm314_vm10, %v502_v57, %v2450_v54  ;;  %v507_v61 = vsel %vm314_vm10, %v503_v58, %v2451_v53  ;;  %v645_v12 = vpop.permute.xlu1 %644 }
 0x2d8   :  { %v510_v62 = vpack.c.bf16 %v507_v61, %v506_v60  ;;  %v643_v8 = vpop.permute.xlu0 %642 }
 0x2da   :  { %2305 = vmatprep.mubr.msk.bf16.mxu1 %vm340_vm11, %v510_v62 }
 0x2db   :  { %2306 = vmatmul.mubr.msk.bf16.vlgmr.msra.gmra.mrb[0].mxu1 %vm340_vm11, %v511_v59  ;;  %v647_v30 = vpop.permute.xlu1 %646 }
 0x2dc   :  { %v641_v26 = vpop.permute.xlu0 %640 }
 0x3ae   :  { %v2307_v0 = vpop.f32.mrb[0].mxu1 }
 0x3af   :  { %v585_v2 = vadd.f32 %v2307_v0, %v2128_v63  ;;  %v576_v3 = vpop.f32.mrb[1].mxu1 }
 0x3b0   :  { %v577_v5 = vadd.f32 %v2128_v63, %v576_v3  ;;  %v2308_v6 = vpop.f32.mrb[2].mxu1 }
 0x3b1   :  { %v593_v9 = vmax.f32 %v585_v2, 0.0  ;;  %v588_v10 = vadd.f32 %v2308_v6, %v2128_v63  ;;  %v579_v11 = vpop.f32.mrb[3].mxu1 }
 0x3b2   :  { %v591_v15 = vmax.f32 %v577_v5, 0.0  ;;  %v580_v16 = vadd.f32 %v2128_v63, %v579_v11 }
 0x3b3   :  { %v605_v17 = vmul.f32 %v2134_v4, %v593_v9  ;;  %v594_v18 = vmax.f32 %v588_v10, 0.0 }
 0x3b4   :  { %v603_v20 = vmul.f32 %v2134_v4, %v591_v15  ;;  %v592_v21 = vmax.f32 %v580_v16, 0.0 }
 0x3b5   :  { %v2942_v22 = vadd.f32 %v2136_v14, %v605_v17  ;;  %v606_v23 = vmul.f32 %v2134_v4, %v594_v18 }
 0x3b6   :  { %v2944_v24 = vadd.f32 %v2136_v14, %v603_v20  ;;  %v604_v25 = vmul.f32 %v2134_v4, %v592_v21 }
 0x3b7   :  { %v654_v27 = vadd.f32 %v645_v12, %v2942_v22  ;;  %v2947_v28 = vadd.f32 %v2136_v14, %v606_v23 }
 0x3b8   :  { %v652_v31 = vadd.f32 %v641_v26, %v2944_v24  ;;  %v2953_v33 = vadd.f32 %v2136_v14, %v604_v25 }
 0x3b9   :  { %v655_v35 = vadd.f32 %v647_v30, %v2947_v28  ;;  %v658_v38 = vrot.slane %v654_v27, 7  ;;  %v670_v46 = vrot.slane %v654_v27, 1  ;;  %v2141_v30 = vld [vmem:[%s3447_s6 + $0x2] ss:$0 sm:$0xff] }
 0x3ba   :  { %v656_v40 = vrot.slane %v652_v31, 7  ;;  %v653_v41 = vadd.f32 %v643_v8, %v2953_v33  ;;  %v668_v42 = vrot.slane %v652_v31, 1 }
 0x3bb   :  { %v659_v43 = vrot.slane %v655_v35, 7  ;;  %v2457_v44 = vpack.i.bf16 %v655_v35, %v654_v27  ;;  %v671_v47 = vrot.slane %v655_v35, 1 }
 0x3bc   :  { %v657_v48 = vrot.slane %v653_v41, 7  ;;  %v2462_v49 = vpack.i.bf16 %v653_v41, %v652_v31  ;;  %v669_v51 = vrot.slane %v653_v41, 1 }
 0x3bd   :  { %2458 = vrot.lane.b32.xlu1 %v2457_v44, %s2623_s20  ;;  %v672_v52 = vsel %vm268_vm3, %v670_v46, %v671_v47  ;;  %v675_v53 = vsel %vm268_vm3, %v671_v47, %v668_v42  ;;  %v660_v54 = vsel %vm255_vm6, %v658_v38, %v659_v43  ;;  %v663_v55 = vsel %vm255_vm6, %v659_v43, %v656_v40 }
 0x3be   :  { %2463 = vrot.lane.b32.xlu0 %v2462_v49, %s2623_s20  ;;  %v679_v56 = vsel %vm2809_vm5, %v675_v53, 0.0  ;;  %v673_v57 = vsel %vm268_vm3, %v669_v51, %v670_v46  ;;  %v674_v58 = vsel %vm268_vm3, %v668_v42, %v669_v51  ;;  %v661_v59 = vsel %vm255_vm6, %v657_v48, %v658_v38  ;;  %v2147_v38 = vld [vmem:[%s3448_s7 + $0x2] ss:$0 sm:$0xff] }
 0x3bf   :  { %v2472_v60 = vpack.i.bf16 %v679_v56, %v672_v52  ;;  %v677_v61 = vsel %vm2796_vm4, %v673_v57, 0.0  ;;  %v662_v62 = vsel %vm255_vm6, %v656_v40, %v657_v48  ;;  %v666_v9 = vsel %vm2845_vm9, %v661_v59, 0.0  ;;  %v2149_v48 = vld [vmem:[%s3449_s8 + $0x2] ss:$0 sm:$0xff] }
 0x3c0   :  { %v2467_v63 = vpack.i.bf16 %v677_v61, %v674_v58  ;;  %v664_v10 = vsel %vm2836_vm7, %v663_v55, 0.0 }
 0x3c1   :  { %2473 = vrot.lane.b32.xlu1 %v2472_v60, %s2624_s21 }
 0x3c2   :  { %2468 = vrot.lane.b32.xlu0 %v2467_v63, %s2624_s21 }
 0x3c5   :  { %854 = vrot.lane.b32.xlu1 %v2772_v32, %s2627_s29 }
 0x3c6   :  { %852 = vrot.lane.b32.xlu0 %v2783_v39, %s2627_s29 }
 0x3c9   :  { %856 = vrot.lane.b32.xlu1 %v2776_v37, %s2627_s29 }
 0x3ca   :  { %850 = vrot.lane.b32.xlu0 %v2774_v34, %s2627_s29  ;;  %s2633_s29 = smov 40  }
 0x42f   :  { %v2459_v0 = vpop.permute.xlu1 %2458 }
 0x430   :  { %v2464_v2 = vpop.permute.xlu0 %2463  ;;  %v2461_v3 = vunpack.i.h.bf16 %v2459_v0  ;;  %v2460_v4 = vunpack.i.l.bf16 %v2459_v0  ;;  %v2568_v0 = vld [vmem:[%s3446_s5 + $0x2c] ss:$0 sps:$4 sm:$0xff]  }
 0x431   :  { %v2466_v5 = vunpack.i.h.bf16 %v2464_v2  ;;  %v2465_v6 = vunpack.i.l.bf16 %v2464_v2 }
 0x432   :  { %v714_v15 = vsel %vm309_vm8, %v666_v9, %v2460_v4  ;;  %v715_v16 = vsel %vm309_vm8, %v660_v54, %v2461_v3  ;;  %v2567_v54 = vld [vmem:[%s3446_s5 + $0x24] sm:$0xff]  }
 0x433   :  { %v2474_v8 = vpop.permute.xlu1 %2473  ;;  %v712_v19 = vsel %vm309_vm8, %v664_v10, %v2465_v6  ;;  %v713_v20 = vsel %vm309_vm8, %v662_v62, %v2466_v5  ;;  %2317 = vmatprep.subr.bf16.mxu1 %v2567_v54  ;;  %v960_v6 = vsel %vm347_vm2, %v2568_v0, 0 }
 0x434   :  { %v2476_v11 = vunpack.i.h.bf16 %v2474_v8  ;;  %v2475_v12 = vunpack.i.l.bf16 %v2474_v8  ;;  %v2469_v14 = vpop.permute.xlu0 %2468  ;;  %2318 = vmatpush3.bf16.msra.mxu1 %v2567_v54 }
 0x435   :  { %v2471_v17 = vunpack.i.h.bf16 %v2469_v14  ;;  %v2470_v18 = vunpack.i.l.bf16 %v2469_v14  ;;  %2396 = vmatprep.subr.msk.bf16.mxu1 %vm347_vm2, %v2568_v0 }
 0x436   :  { %v719_v21 = vsel %vm314_vm10, %v715_v16, %v2476_v11  ;;  %v718_v23 = vsel %vm314_vm10, %v714_v15, %v2475_v12 }
 0x437   :  { %v721_v25 = vpack.c.bf16 %v719_v21, %v718_v23  ;;  %v716_v26 = vsel %vm314_vm10, %v712_v19, %v2470_v18  ;;  %v717_v27 = vsel %vm314_vm10, %v713_v20, %v2471_v17  ;;  %v855_v47 = vpop.permute.xlu1 %854 }
 0x438   :  { %v720_v29 = vpack.c.bf16 %v717_v27, %v716_v26  ;;  %v853_v42 = vpop.permute.xlu0 %852  ;;  %2320 = vmatpush3.bf16.msra.mxu1 %v960_v6 }
 0x43a   :  { %2313 = vmatprep.mubr.msk.bf16.mxu0 %vm340_vm11, %v720_v29 }
 0x43b   :  { %2314 = vmatmul.mubr.msk.bf16.vlgmr.msra.gmra.mrb[8].mxu0 %vm340_vm11, %v721_v25  ;;  %v857_v2 = vpop.permute.xlu1 %856 }
 0x43c   :  { %v851_v61 = vpop.permute.xlu0 %850 }
 0x50e   :  { %v2315_v31 = vpop.f32.mrb[8].mxu0 }
 0x50f   :  { %v795_v35 = vadd.f32 %v2315_v31, %v2141_v30  ;;  %v786_v36 = vpop.f32.mrb[9].mxu0 }
 0x510   :  { %v787_v40 = vadd.f32 %v2141_v30, %v786_v36  ;;  %v2316_v41 = vpop.f32.mrb[10].mxu0 }
 0x511   :  { %v803_v43 = vmax.f32 %v795_v35, 0.0  ;;  %v798_v44 = vadd.f32 %v2316_v41, %v2141_v30  ;;  %v789_v46 = vpop.f32.mrb[11].mxu0 }
 0x512   :  { %v801_v49 = vmax.f32 %v787_v40, 0.0  ;;  %v790_v51 = vadd.f32 %v2141_v30, %v789_v46 }
 0x513   :  { %v815_v52 = vmul.f32 %v2147_v38, %v803_v43  ;;  %v804_v53 = vmax.f32 %v798_v44, 0.0 }
 0x514   :  { %v813_v55 = vmul.f32 %v2147_v38, %v801_v49  ;;  %v802_v56 = vmax.f32 %v790_v51, 0.0 }
 0x515   :  { %v3013_v57 = vadd.f32 %v2149_v48, %v815_v52  ;;  %v816_v58 = vmul.f32 %v2147_v38, %v804_v53 }
 0x516   :  { %v3015_v59 = vadd.f32 %v2149_v48, %v813_v55  ;;  %v814_v60 = vmul.f32 %v2147_v38, %v802_v56 }
 0x517   :  { %v864_v62 = vadd.f32 %v855_v47, %v3013_v57  ;;  %v3018_v63 = vadd.f32 %v2149_v48, %v816_v58 }
 0x518   :  { %v862_v3 = vadd.f32 %v851_v61, %v3015_v59  ;;  %v3024_v4 = vadd.f32 %v2149_v48, %v814_v60 }
 0x519   :  { %v865_v5 = vadd.f32 %v857_v2, %v3018_v63  ;;  %v868_v8 = vrot.slane %v864_v62, 7  ;;  %v880_v15 = vrot.slane %v864_v62, 1 }
 0x51a   :  { %v866_v9 = vrot.slane %v862_v3, 7  ;;  %v863_v10 = vadd.f32 %v853_v42, %v3024_v4  ;;  %v878_v11 = vrot.slane %v862_v3, 1 }
 0x51b   :  { %v869_v12 = vrot.slane %v865_v5, 7  ;;  %v2477_v14 = vpack.i.bf16 %v865_v5, %v864_v62  ;;  %v881_v16 = vrot.slane %v865_v5, 1 }
 0x51c   :  { %v867_v17 = vrot.slane %v863_v10, 7  ;;  %v2482_v18 = vpack.i.bf16 %v863_v10, %v862_v3  ;;  %v879_v19 = vrot.slane %v863_v10, 1 }
 0x51d   :  { %2478 = vrot.lane.b32.xlu1 %v2477_v14, %s2623_s20  ;;  %v882_v20 = vsel %vm268_vm3, %v880_v15, %v881_v16  ;;  %v885_v21 = vsel %vm268_vm3, %v881_v16, %v878_v11  ;;  %v870_v23 = vsel %vm255_vm6, %v868_v8, %v869_v12  ;;  %v873_v25 = vsel %vm255_vm6, %v869_v12, %v866_v9  ;;  %v2160_v12 = vld [vmem:[%s3448_s7 + $0x3] ss:$0 sm:$0xff] }
 0x51e   :  { %2483 = vrot.lane.b32.xlu0 %v2482_v18, %s2623_s20  ;;  %v889_v26 = vsel %vm2809_vm5, %v885_v21, 0.0  ;;  %v883_v27 = vsel %vm268_vm3, %v879_v19, %v880_v15  ;;  %v884_v29 = vsel %vm268_vm3, %v878_v11, %v879_v19  ;;  %v871_v30 = vsel %vm255_vm6, %v867_v17, %v868_v8  ;;  %v2154_v8 = vld [vmem:[%s3447_s6 + $0x3] ss:$0 sm:$0xff] }
 0x51f   :  { %v2492_v31 = vpack.i.bf16 %v889_v26, %v882_v20  ;;  %v887_v35 = vsel %vm2796_vm4, %v883_v27, 0.0  ;;  %v872_v36 = vsel %vm255_vm6, %v866_v9, %v867_v17  ;;  %v876_v48 = vsel %vm2845_vm9, %v871_v30, 0.0  ;;  %v2162_v21 = vld [vmem:[%s3449_s8 + $0x3] ss:$0 sm:$0xff] }
 0x520   :  { %v2487_v38 = vpack.i.bf16 %v887_v35, %v884_v29  ;;  %v874_v49 = vsel %vm2836_vm7, %v873_v25, 0.0  ;;  %v2569_v29 = vld [vmem:[%s3446_s5 + $0x30] sm:$0xff]  }
 0x521   :  { %2493 = vrot.lane.b32.xlu1 %v2492_v31, %s2624_s21  ;;  %2325 = vmatprep.subr.bf16.mxu0 %v2569_v29 }
 0x522   :  { %2488 = vrot.lane.b32.xlu0 %v2487_v38, %s2624_s21  ;;  %2326 = vmatpush3.bf16.msra.mxu0 %v2569_v29 }
 0x525   :  { %1064 = vrot.lane.b32.xlu1 %v2772_v32, %s2628_s25 }
 0x526   :  { %1062 = vrot.lane.b32.xlu0 %v2783_v39, %s2628_s25 }
 0x529   :  { %1066 = vrot.lane.b32.xlu1 %v2776_v37, %s2628_s25 }
 0x52a   :  { %1060 = vrot.lane.b32.xlu0 %v2774_v34, %s2628_s25 }
 0x58f   :  { %v2479_v40 = vpop.permute.xlu1 %2478 }
 0x590   :  { %v2484_v41 = vpop.permute.xlu0 %2483  ;;  %v2481_v42 = vunpack.i.h.bf16 %v2479_v40  ;;  %v2480_v43 = vunpack.i.l.bf16 %v2479_v40 }
 0x591   :  { %v2486_v44 = vunpack.i.h.bf16 %v2484_v41  ;;  %v2485_v46 = vunpack.i.l.bf16 %v2484_v41 }
 0x592   :  { %v924_v54 = vsel %vm309_vm8, %v876_v48, %v2480_v43  ;;  %v925_v55 = vsel %vm309_vm8, %v870_v23, %v2481_v42 }
 0x593   :  { %v2494_v47 = vpop.permute.xlu1 %2493  ;;  %v922_v60 = vsel %vm309_vm8, %v874_v49, %v2485_v46  ;;  %v923_v61 = vsel %vm309_vm8, %v872_v36, %v2486_v44  ;;  %v2570_v44 = vld [vmem:[%s3446_s5 + $0x38] ss:$0 sps:$4 sm:$0xff]  }
 0x594   :  { %v2496_v51 = vunpack.i.h.bf16 %v2494_v47  ;;  %v2495_v52 = vunpack.i.l.bf16 %v2494_v47  ;;  %v2489_v53 = vpop.permute.xlu0 %2488  ;;  %2397 = vmatprep.subr.msk.bf16.mxu0 %vm347_vm2, %v2570_v44 }
 0x595   :  { %v2491_v56 = vunpack.i.h.bf16 %v2489_v53  ;;  %v2490_v58 = vunpack.i.l.bf16 %v2489_v53 }
 0x596   :  { %v929_v62 = vsel %vm314_vm10, %v925_v55, %v2496_v51  ;;  %v928_v0 = vsel %vm314_vm10, %v924_v54, %v2495_v52  ;;  %v1170_v51 = vsel %vm347_vm2, %v2570_v44, 0 }
 0x597   :  { %v931_v2 = vpack.c.bf16 %v929_v62, %v928_v0  ;;  %v926_v3 = vsel %vm314_vm10, %v922_v60, %v2490_v58  ;;  %v927_v5 = vsel %vm314_vm10, %v923_v61, %v2491_v56  ;;  %v1065_v20 = vpop.permute.xlu1 %1064  ;;  %2328 = vmatpush3.bf16.msra.mxu0 %v1170_v51 }
 0x598   :  { %v930_v6 = vpack.c.bf16 %v927_v5, %v926_v3  ;;  %v1063_v16 = vpop.permute.xlu0 %1062 }
 0x59a   :  { %2321 = vmatprep.mubr.msk.bf16.mxu1 %vm340_vm11, %v930_v6 }
 0x59b   :  { %2322 = vmatmul.mubr.msk.bf16.vlgmr.msra.gmra.mrb[4].mxu1 %vm340_vm11, %v931_v2  ;;  %v1067_v46 = vpop.permute.xlu1 %1066 }
 0x59c   :  { %v1061_v41 = vpop.permute.xlu0 %1060 }
 0x66e   :  { %v2323_v9 = vpop.f32.mrb[4].mxu1 }
 0x66f   :  { %v1005_v10 = vadd.f32 %v2323_v9, %v2154_v8  ;;  %v996_v11 = vpop.f32.mrb[5].mxu1 }
 0x670   :  { %v997_v14 = vadd.f32 %v2154_v8, %v996_v11  ;;  %v2324_v15 = vpop.f32.mrb[6].mxu1 }
 0x671   :  { %v1013_v17 = vmax.f32 %v1005_v10, 0.0  ;;  %v1008_v18 = vadd.f32 %v2324_v15, %v2154_v8  ;;  %v999_v19 = vpop.f32.mrb[7].mxu1 }
 0x672   :  { %v1011_v23 = vmax.f32 %v997_v14, 0.0  ;;  %v1000_v25 = vadd.f32 %v2154_v8, %v999_v19 }
 0x673   :  { %v1025_v26 = vmul.f32 %v2160_v12, %v1013_v17  ;;  %v1014_v27 = vmax.f32 %v1008_v18, 0.0 }
 0x674   :  { %v1023_v30 = vmul.f32 %v2160_v12, %v1011_v23  ;;  %v1012_v31 = vmax.f32 %v1000_v25, 0.0 }
 0x675   :  { %v3084_v35 = vadd.f32 %v2162_v21, %v1025_v26  ;;  %v1026_v36 = vmul.f32 %v2160_v12, %v1014_v27 }
 0x676   :  { %v3086_v38 = vadd.f32 %v2162_v21, %v1023_v30  ;;  %v1024_v40 = vmul.f32 %v2160_v12, %v1012_v31 }
 0x677   :  { %v1074_v42 = vadd.f32 %v1065_v20, %v3084_v35  ;;  %v3089_v43 = vadd.f32 %v2162_v21, %v1026_v36 }
 0x678   :  { %v1072_v47 = vadd.f32 %v1061_v41, %v3086_v38  ;;  %v3095_v48 = vadd.f32 %v2162_v21, %v1024_v40 }
 0x679   :  { %v1075_v49 = vadd.f32 %v1067_v46, %v3089_v43  ;;  %v1078_v52 = vrot.slane %v1074_v42, 7  ;;  %v1090_v60 = vrot.slane %v1074_v42, 1 }
 0x67a   :  { %v1076_v53 = vrot.slane %v1072_v47, 7  ;;  %v1073_v54 = vadd.f32 %v1063_v16, %v3095_v48  ;;  %v1088_v55 = vrot.slane %v1072_v47, 1 }
 0x67b   :  { %v1079_v56 = vrot.slane %v1075_v49, 7  ;;  %v2497_v58 = vpack.i.bf16 %v1075_v49, %v1074_v42  ;;  %v1091_v61 = vrot.slane %v1075_v49, 1 }
 0x67c   :  { %v1077_v62 = vrot.slane %v1073_v54, 7  ;;  %v2502_v0 = vpack.i.bf16 %v1073_v54, %v1072_v47  ;;  %v1089_v2 = vrot.slane %v1073_v54, 1 }
 0x67d   :  { %2498 = vrot.lane.b32.xlu1 %v2497_v58, %s2623_s20  ;;  %v1092_v3 = vsel %vm268_vm3, %v1090_v60, %v1091_v61  ;;  %v1095_v5 = vsel %vm268_vm3, %v1091_v61, %v1088_v55  ;;  %v1080_v6 = vsel %vm255_vm6, %v1078_v52, %v1079_v56  ;;  %v1083_v8 = vsel %vm255_vm6, %v1079_v56, %v1076_v53  ;;  %v2167_v56 = vld [vmem:[%s3447_s6 + $0x4] ss:$0 sm:$0xff] }
 0x67e   :  { %2503 = vrot.lane.b32.xlu0 %v2502_v0, %s2623_s20  ;;  %v1099_v9 = vsel %vm2809_vm5, %v1095_v5, 0.0  ;;  %v1093_v10 = vsel %vm268_vm3, %v1089_v2, %v1090_v60  ;;  %v1094_v11 = vsel %vm268_vm3, %v1088_v55, %v1089_v2  ;;  %v1081_v12 = vsel %vm255_vm6, %v1077_v62, %v1078_v52 }
 0x67f   :  { %v2512_v14 = vpack.i.bf16 %v1099_v9, %v1092_v3  ;;  %v1097_v15 = vsel %vm2796_vm4, %v1093_v10, 0.0  ;;  %v1082_v16 = vsel %vm255_vm6, %v1076_v53, %v1077_v62  ;;  %v1086_v27 = vsel %vm2845_vm9, %v1081_v12, 0.0  ;;  %v2173_v62 = vld [vmem:[%s3448_s7 + $0x4] ss:$0 sm:$0xff] }
 0x680   :  { %v2507_v17 = vpack.i.bf16 %v1097_v15, %v1094_v11  ;;  %v1084_v29 = vsel %vm2836_vm7, %v1083_v8, 0.0  ;;  %v2175_v10 = vld [vmem:[%s3449_s8 + $0x4] ss:$0 sm:$0xff] }
 0x681   :  { %2513 = vrot.lane.b32.xlu1 %v2512_v14, %s2624_s21 }
 0x682   :  { %2508 = vrot.lane.b32.xlu0 %v2507_v17, %s2624_s21 }
 0x685   :  { %1274 = vrot.lane.b32.xlu1 %v2772_v32, %s2629_s4 }
 0x686   :  { %1272 = vrot.lane.b32.xlu0 %v2783_v39, %s2629_s4 }
 0x689   :  { %1276 = vrot.lane.b32.xlu1 %v2776_v37, %s2629_s4 }
 0x68a   :  { %1270 = vrot.lane.b32.xlu0 %v2774_v34, %s2629_s4 }
 0x6ef   :  { %v2499_v18 = vpop.permute.xlu1 %2498 }
 0x6f0   :  { %v2504_v19 = vpop.permute.xlu0 %2503  ;;  %v2501_v20 = vunpack.i.h.bf16 %v2499_v18  ;;  %v2500_v21 = vunpack.i.l.bf16 %v2499_v18 }
 0x6f1   :  { %v2506_v23 = vunpack.i.h.bf16 %v2504_v19  ;;  %v2505_v25 = vunpack.i.l.bf16 %v2504_v19 }
 0x6f2   :  { %v1134_v40 = vsel %vm309_vm8, %v1086_v27, %v2500_v21  ;;  %v1135_v41 = vsel %vm309_vm8, %v1080_v6, %v2501_v20 }
 0x6f3   :  { %v2514_v26 = vpop.permute.xlu1 %2513  ;;  %v1132_v46 = vsel %vm309_vm8, %v1084_v29, %v2505_v25  ;;  %v1133_v47 = vsel %vm309_vm8, %v1082_v16, %v2506_v23  ;;  %v2571_v16 = vld [vmem:[%s3446_s5 + $0x3c] sm:$0xff]   ;;  %v2572_v29 = vld [vmem:[%s3446_s5 + $0x44] ss:$0 sps:$4 sm:$0xff]  }
 0x6f4   :  { %v2516_v30 = vunpack.i.h.bf16 %v2514_v26  ;;  %v2515_v31 = vunpack.i.l.bf16 %v2514_v26  ;;  %v2509_v36 = vpop.permute.xlu0 %2508  ;;  %2333 = vmatprep.subr.bf16.mxu1 %v2571_v16 }
 0x6f5   :  { %v2511_v42 = vunpack.i.h.bf16 %v2509_v36  ;;  %v2510_v44 = vunpack.i.l.bf16 %v2509_v36  ;;  %2334 = vmatpush3.bf16.msra.mxu1 %v2571_v16 }
 0x6f6   :  { %v1139_v49 = vsel %vm314_vm10, %v1135_v41, %v2516_v30  ;;  %v1138_v51 = vsel %vm314_vm10, %v1134_v40, %v2515_v31  ;;  %2398 = vmatprep.subr.msk.bf16.mxu1 %vm347_vm2, %v2572_v29  ;;  %v1380_v41 = vsel %vm347_vm2, %v2572_v29, 0 }
 0x6f7   :  { %v1141_v52 = vpack.c.bf16 %v1139_v49, %v1138_v51  ;;  %v1136_v53 = vsel %vm314_vm10, %v1132_v46, %v2510_v44  ;;  %v1137_v54 = vsel %vm314_vm10, %v1133_v47, %v2511_v42  ;;  %v1275_v9 = vpop.permute.xlu1 %1274 }
 0x6f8   :  { %v1140_v55 = vpack.c.bf16 %v1137_v54, %v1136_v53  ;;  %v1273_v3 = vpop.permute.xlu0 %1272 }
 0x6f9   :  { %2336 = vmatpush3.bf16.msra.mxu1 %v1380_v41 }
 0x6fa   :  { %2329 = vmatprep.mubr.msk.bf16.mxu0 %vm340_vm11, %v1140_v55 }
 0x6fb   :  { %2330 = vmatmul.mubr.msk.bf16.vlgmr.msra.gmra.mrb[12].mxu0 %vm340_vm11, %v1141_v52  ;;  %v1277_v30 = vpop.permute.xlu1 %1276 }
 0x6fc   :  { %v1271_v25 = vpop.permute.xlu0 %1270 }
 0x7ce   :  { %v2331_v58 = vpop.f32.mrb[12].mxu0 }
 0x7cf   :  { %v1215_v60 = vadd.f32 %v2331_v58, %v2167_v56  ;;  %v1206_v61 = vpop.f32.mrb[13].mxu0 }
 0x7d0   :  { %v1207_v0 = vadd.f32 %v2167_v56, %v1206_v61  ;;  %v2332_v2 = vpop.f32.mrb[14].mxu0 }
 0x7d1   :  { %v1223_v5 = vmax.f32 %v1215_v60, 0.0  ;;  %v1218_v6 = vadd.f32 %v2332_v2, %v2167_v56  ;;  %v1209_v8 = vpop.f32.mrb[15].mxu0 }
 0x7d2   :  { %v1221_v11 = vmax.f32 %v1207_v0, 0.0  ;;  %v1210_v12 = vadd.f32 %v2167_v56, %v1209_v8 }
 0x7d3   :  { %v1235_v14 = vmul.f32 %v2173_v62, %v1223_v5  ;;  %v1224_v15 = vmax.f32 %v1218_v6, 0.0 }
 0x7d4   :  { %v1233_v17 = vmul.f32 %v2173_v62, %v1221_v11  ;;  %v1222_v18 = vmax.f32 %v1210_v12, 0.0 }
 0x7d5   :  { %v3155_v19 = vadd.f32 %v2175_v10, %v1235_v14  ;;  %v1236_v20 = vmul.f32 %v2173_v62, %v1224_v15 }
 0x7d6   :  { %v3157_v21 = vadd.f32 %v2175_v10, %v1233_v17  ;;  %v1234_v23 = vmul.f32 %v2173_v62, %v1222_v18 }
 0x7d7   :  { %v1284_v26 = vadd.f32 %v1275_v9, %v3155_v19  ;;  %v3160_v27 = vadd.f32 %v2175_v10, %v1236_v20 }
 0x7d8   :  { %v1282_v31 = vadd.f32 %v1271_v25, %v3157_v21  ;;  %v3166_v36 = vadd.f32 %v2175_v10, %v1234_v23 }
 0x7d9   :  { %v1285_v40 = vadd.f32 %v1277_v30, %v3160_v27  ;;  %v1288_v42 = vrot.slane %v1284_v26, 7  ;;  %v1300_v52 = vrot.slane %v1284_v26, 1 }
 0x7da   :  { %v1286_v44 = vrot.slane %v1282_v31, 7  ;;  %v1283_v46 = vadd.f32 %v1273_v3, %v3166_v36  ;;  %v1298_v47 = vrot.slane %v1282_v31, 1 }
 0x7db   :  { %v1289_v49 = vrot.slane %v1285_v40, 7  ;;  %v2517_v51 = vpack.i.bf16 %v1285_v40, %v1284_v26  ;;  %v1301_v53 = vrot.slane %v1285_v40, 1 }
 0x7dc   :  { %v1287_v54 = vrot.slane %v1283_v46, 7  ;;  %v2522_v55 = vpack.i.bf16 %v1283_v46, %v1282_v31  ;;  %v1299_v56 = vrot.slane %v1283_v46, 1 }
 0x7dd   :  { %2518 = vrot.lane.b32.xlu1 %v2517_v51, %s2623_s20  ;;  %v1302_v58 = vsel %vm268_vm3, %v1300_v52, %v1301_v53  ;;  %v1305_v60 = vsel %vm268_vm3, %v1301_v53, %v1298_v47  ;;  %v1290_v61 = vsel %vm255_vm6, %v1288_v42, %v1289_v49  ;;  %v1293_v62 = vsel %vm255_vm6, %v1289_v49, %v1286_v44  ;;  %v2180_v49 = vld [vmem:[%s3447_s6 + $0x5] ss:$0 sm:$0xff] }
 0x7de   :  { %2523 = vrot.lane.b32.xlu0 %v2522_v55, %s2623_s20  ;;  %v1309_v0 = vsel %vm2809_vm5, %v1305_v60, 0.0  ;;  %v1303_v2 = vsel %vm268_vm3, %v1299_v56, %v1300_v52  ;;  %v1304_v3 = vsel %vm268_vm3, %v1298_v47, %v1299_v56  ;;  %v1291_v5 = vsel %vm255_vm6, %v1287_v54, %v1288_v42 }
 0x7df   :  { %v2532_v6 = vpack.i.bf16 %v1309_v0, %v1302_v58  ;;  %v1307_v8 = vsel %vm2796_vm4, %v1303_v2, 0.0  ;;  %v1292_v9 = vsel %vm255_vm6, %v1286_v44, %v1287_v54  ;;  %v1296_v20 = vsel %vm2845_vm9, %v1291_v5, 0.0  ;;  %v2186_v54 = vld [vmem:[%s3448_s7 + $0x5] ss:$0 sm:$0xff] }
 0x7e0   :  { %v2527_v10 = vpack.i.bf16 %v1307_v8, %v1304_v3  ;;  %v1294_v23 = vsel %vm2836_vm7, %v1293_v62, 0.0  ;;  %v2188_v2 = vld [vmem:[%s3449_s8 + $0x5] ss:$0 sm:$0xff] }
 0x7e1   :  { %2533 = vrot.lane.b32.xlu1 %v2532_v6, %s2624_s21 }
 0x7e2   :  { %2528 = vrot.lane.b32.xlu0 %v2527_v10, %s2624_s21 }
 0x7e5   :  { %1484 = vrot.lane.b32.xlu1 %v2772_v32, %s2630_s18 }
 0x7e6   :  { %1482 = vrot.lane.b32.xlu0 %v2783_v39, %s2630_s18 }
 0x7e9   :  { %1486 = vrot.lane.b32.xlu1 %v2776_v37, %s2630_s18 }
 0x7ea   :  { %1480 = vrot.lane.b32.xlu0 %v2774_v34, %s2630_s18 }
 0x84f   :  { %v2519_v11 = vpop.permute.xlu1 %2518 }
 0x850   :  { %v2524_v12 = vpop.permute.xlu0 %2523  ;;  %v2521_v14 = vunpack.i.h.bf16 %v2519_v11  ;;  %v2520_v15 = vunpack.i.l.bf16 %v2519_v11 }
 0x851   :  { %v2526_v16 = vunpack.i.h.bf16 %v2524_v12  ;;  %v2525_v17 = vunpack.i.l.bf16 %v2524_v12 }
 0x852   :  { %v1344_v37 = vsel %vm309_vm8, %v1296_v20, %v2520_v15  ;;  %v1345_v34 = vsel %vm309_vm8, %v1290_v61, %v2521_v14 }
 0x853   :  { %v2534_v18 = vpop.permute.xlu1 %2533  ;;  %v1342_v30 = vsel %vm309_vm8, %v1294_v23, %v2525_v17  ;;  %v1343_v31 = vsel %vm309_vm8, %v1292_v9, %v2526_v16  ;;  %v2573_v9 = vld [vmem:[%s3446_s5 + $0x48] sm:$0xff]   ;;  %v2574_v23 = vld [vmem:[%s3446_s5 + $0x50] ss:$0 sps:$4 sm:$0xff]   ;;  %s2631_s5 = smov 24  }
 0x854   :  { %v2536_v32 = vunpack.i.h.bf16 %v2534_v18  ;;  %v2535_v25 = vunpack.i.l.bf16 %v2534_v18  ;;  %v2529_v39 = vpop.permute.xlu0 %2528  ;;  %2341 = vmatprep.subr.bf16.mxu0 %v2573_v9 }
 0x855   :  { %v2531_v26 = vunpack.i.h.bf16 %v2529_v39  ;;  %v2530_v29 = vunpack.i.l.bf16 %v2529_v39  ;;  %2342 = vmatpush3.bf16.msra.mxu0 %v2573_v9 }
 0x856   :  { %v1349_v40 = vsel %vm314_vm10, %v1345_v34, %v2536_v32  ;;  %v1348_v41 = vsel %vm314_vm10, %v1344_v37, %v2535_v25  ;;  %2399 = vmatprep.subr.msk.bf16.mxu0 %vm347_vm2, %v2574_v23  ;;  %v1590_v34 = vsel %vm347_vm2, %v2574_v23, 0  ;;  %vm1685_vm2 = vcmask 458112  }
 0x857   :  { %v1351_v42 = vpack.c.bf16 %v1349_v40, %v1348_v41  ;;  %v1346_v44 = vsel %vm314_vm10, %v1342_v30, %v2530_v29  ;;  %v1347_v46 = vsel %vm314_vm10, %v1343_v31, %v2531_v26  ;;  %v1485_v0 = vpop.permute.xlu1 %1484 }
 0x858   :  { %v1350_v47 = vpack.c.bf16 %v1347_v46, %v1346_v44  ;;  %v1483_v58 = vpop.permute.xlu0 %1482 }
 0x859   :  { %2344 = vmatpush3.bf16.msra.mxu0 %v1590_v34 }
 0x85a   :  { %2337 = vmatprep.mubr.msk.bf16.mxu1 %vm340_vm11, %v1350_v47 }
 0x85b   :  { %2338 = vmatmul.mubr.msk.bf16.vlgmr.msra.gmra.mrb[8].mxu1 %vm340_vm11, %v1351_v42  ;;  %v1487_v32 = vpop.permute.xlu1 %1486 }
 0x85c   :  { %v1481_v17 = vpop.permute.xlu0 %1480 }
 0x92e   :  { %v2339_v51 = vpop.f32.mrb[8].mxu1 }
 0x92f   :  { %v1425_v52 = vadd.f32 %v2339_v51, %v2180_v49  ;;  %v1416_v53 = vpop.f32.mrb[9].mxu1 }
 0x930   :  { %v1417_v55 = vadd.f32 %v2180_v49, %v1416_v53  ;;  %v2340_v56 = vpop.f32.mrb[10].mxu1 }
 0x931   :  { %v1433_v60 = vmax.f32 %v1425_v52, 0.0  ;;  %v1428_v61 = vadd.f32 %v2340_v56, %v2180_v49  ;;  %v1419_v62 = vpop.f32.mrb[11].mxu1 }
 0x932   :  { %v1431_v3 = vmax.f32 %v1417_v55, 0.0  ;;  %v1420_v5 = vadd.f32 %v2180_v49, %v1419_v62 }
 0x933   :  { %v1445_v6 = vmul.f32 %v2186_v54, %v1433_v60  ;;  %v1434_v8 = vmax.f32 %v1428_v61, 0.0 }
 0x934   :  { %v1443_v10 = vmul.f32 %v2186_v54, %v1431_v3  ;;  %v1432_v11 = vmax.f32 %v1420_v5, 0.0 }
 0x935   :  { %v3226_v12 = vadd.f32 %v2188_v2, %v1445_v6  ;;  %v1446_v14 = vmul.f32 %v2186_v54, %v1434_v8 }
 0x936   :  { %v1455_v15 = vadd.f32 %v2188_v2, %v1443_v10  ;;  %v1444_v16 = vmul.f32 %v2186_v54, %v1432_v11 }
 0x937   :  { %v1494_v18 = vadd.f32 %v1485_v0, %v3226_v12  ;;  %v1458_v20 = vadd.f32 %v2188_v2, %v1446_v14 }
 0x938   :  { %v1492_v25 = vadd.f32 %v1481_v17, %v1455_v15  ;;  %v1456_v39 = vadd.f32 %v2188_v2, %v1444_v16 }
 0x939   :  { %v1495_v37 = vadd.f32 %v1487_v32, %v1458_v20  ;;  %v1498_v26 = vrot.slane %v1494_v18, 7  ;;  %v1510_v42 = vrot.slane %v1494_v18, 1 }
 0x93a   :  { %v1496_v29 = vrot.slane %v1492_v25, 7  ;;  %v1493_v30 = vadd.f32 %v1483_v58, %v1456_v39  ;;  %v1508_v31 = vrot.slane %v1492_v25, 1 }
 0x93b   :  { %v1499_v40 = vrot.slane %v1495_v37, 7  ;;  %v2537_v41 = vpack.i.bf16 %v1495_v37, %v1494_v18  ;;  %v1511_v44 = vrot.slane %v1495_v37, 1 }
 0x93c   :  { %v1497_v46 = vrot.slane %v1493_v30, 7  ;;  %v2542_v47 = vpack.i.bf16 %v1493_v30, %v1492_v25  ;;  %v1509_v49 = vrot.slane %v1493_v30, 1 }
 0x93d   :  { %2538 = vrot.lane.b32.xlu1 %v2537_v41, %s2623_s20  ;;  %v1512_v51 = vsel %vm268_vm3, %v1510_v42, %v1511_v44  ;;  %v1515_v52 = vsel %vm268_vm3, %v1511_v44, %v1508_v31  ;;  %v1500_v53 = vsel %vm255_vm6, %v1498_v26, %v1499_v40  ;;  %v1503_v54 = vsel %vm255_vm6, %v1499_v40, %v1496_v29  ;;  %v2575_v40 = vld [vmem:[%s3450_s9] sm:$0xff]  }
 0x93e   :  { %2543 = vrot.lane.b32.xlu0 %v2542_v47, %s2623_s20  ;;  %v1519_v55 = vsel %vm2809_vm5, %v1515_v52, 0.0  ;;  %v1513_v56 = vsel %vm268_vm3, %v1509_v49, %v1510_v42  ;;  %v1514_v58 = vsel %vm268_vm3, %v1508_v31, %v1509_v49  ;;  %v1501_v60 = vsel %vm255_vm6, %v1497_v46, %v1498_v26  ;;  %v2193_v41 = vld [vmem:[%s3447_s6 + $0x6] ss:$0 sm:$0xff]  ;;  %2349 = vmatprep.subr.bf16.mxu1 %v2575_v40  ;;  %v2576_v47 = vld [vmem:[%s3450_s9 + $0x8] sm:$0xff]  }
 0x93f   :  { %v2552_v61 = vpack.i.bf16 %v1519_v55, %v1512_v51  ;;  %v1517_v62 = vsel %vm2796_vm4, %v1513_v56, 0.0  ;;  %v1502_v0 = vsel %vm255_vm6, %v1496_v29, %v1497_v46  ;;  %2350 = vmatpush3.bf16.msra.mxu1 %v2575_v40  ;;  %v2199_v52 = vld [vmem:[%s3448_s7 + $0x6] ss:$0 sm:$0xff]  ;;  %v2577_v55 = vld [vmem:[%s3450_s9 + $0x10] sm:$0xff]   ;;  %s2634_s7 = smov 48   ;;  %vm2636_vm3 = vmmov 0  }
 0x940   :  { %v2547_v2 = vpack.i.bf16 %v1517_v62, %v1514_v58  ;;  %2351 = vmatprep.subr.bf16.mxu1 %v2576_v47  ;;  %v2578_v62 = vld [vmem:[%s3450_s9 + $0x18] sm:$0xff]   ;;  %vm1858_vm4 = vcmask 1041409  }
 0x941   :  { %2553 = vrot.lane.b32.xlu1 %v2552_v61, %s2624_s21  ;;  %v2201_v61 = vld [vmem:[%s3449_s8 + $0x6] ss:$0 sm:$0xff] }
 0x942   :  { %2548 = vrot.lane.b32.xlu0 %v2547_v2, %s2624_s21 }
 0x943   :  { %2352 = vmatpush3.bf16.msra.mxu1 %v2576_v47 }
 0x944   :  { %2353 = vmatprep.subr.bf16.mxu1 %v2577_v55 }
 0x945   :  { %625 = vrot.lane.b32.xlu1 %v2953_v33, %s2623_s20 }
 0x946   :  { %623 = vrot.lane.b32.xlu0 %v2944_v24, %s2623_s20 }
 0x947   :  { %2354 = vmatpush3.bf16.msra.mxu1 %v2577_v55 }
 0x948   :  { %2355 = vmatprep.subr.bf16.mxu1 %v2578_v62 }
 0x949   :  { %629 = vrot.lane.b32.xlu1 %v2947_v28, %s2623_s20 }
 0x94a   :  { %627 = vrot.lane.b32.xlu0 %v2942_v22, %s2623_s20 }
 0x94b   :  { %2356 = vmatpush3.bf16.msra.mxu1 %v2578_v62 }
 0x94d   :  { %835 = vrot.lane.b32.xlu1 %v3024_v4, %s2624_s21 }
 0x94e   :  { %833 = vrot.lane.b32.xlu0 %v3015_v59, %s2624_s21  ;;  %v1506_v59 = vsel %vm2845_vm9, %v1501_v60, 0.0 }
 0x951   :  { %839 = vrot.lane.b32.xlu1 %v3018_v63, %s2624_s21  ;;  %v1504_v63 = vsel %vm2836_vm7, %v1503_v54, 0.0 }
 0x952   :  { %837 = vrot.lane.b32.xlu0 %v3013_v57, %s2624_s21 }
 0x955   :  { %1045 = vrot.lane.b32.xlu1 %v3095_v48, %s2631_s5 }
 0x956   :  { %1043 = vrot.lane.b32.xlu0 %v3086_v38, %s2631_s5 }
 0x959   :  { %1049 = vrot.lane.b32.xlu1 %v3089_v43, %s2631_s5 }
 0x95a   :  { %1047 = vrot.lane.b32.xlu0 %v3084_v35, %s2631_s5 }
 0x95d   :  { %1255 = vrot.lane.b32.xlu1 %v3166_v36, %s2632_s28 }
 0x95e   :  { %1253 = vrot.lane.b32.xlu0 %v3157_v21, %s2632_s28 }
 0x961   :  { %1259 = vrot.lane.b32.xlu1 %v3160_v27, %s2632_s28 }
 0x962   :  { %1257 = vrot.lane.b32.xlu0 %v3155_v19, %s2632_s28 }
 0x965   :  { %1465 = vrot.lane.b32.xlu1 %v1456_v39, %s2633_s29 }
 0x966   :  { %1463 = vrot.lane.b32.xlu0 %v1455_v15, %s2633_s29 }
 0x969   :  { %1469 = vrot.lane.b32.xlu1 %v1458_v20, %s2633_s29 }
 0x96a   :  { %1467 = vrot.lane.b32.xlu0 %v3226_v12, %s2633_s29 }
 0x9af   :  { %v2539_v45 = vpop.permute.xlu1 %2538 }
 0x9b0   :  { %v2544_v50 = vpop.permute.xlu0 %2543  ;;  %v2541_v22 = vunpack.i.h.bf16 %v2539_v45  ;;  %v2540_v24 = vunpack.i.l.bf16 %v2539_v45 }
 0x9b1   :  { %v2546_v28 = vunpack.i.h.bf16 %v2544_v50  ;;  %v2545_v33 = vunpack.i.l.bf16 %v2544_v50 }
 0x9b2   :  { %v1554_v43 = vsel %vm309_vm8, %v1506_v59, %v2540_v24  ;;  %v1555_v48 = vsel %vm309_vm8, %v1500_v53, %v2541_v22 }
 0x9b3   :  { %v2554_v57 = vpop.permute.xlu1 %2553  ;;  %v1552_v27 = vsel %vm309_vm8, %v1504_v63, %v2545_v33  ;;  %v1553_v36 = vsel %vm309_vm8, %v1502_v0, %v2546_v28 }
 0x9b4   :  { %v2556_v4 = vunpack.i.h.bf16 %v2554_v57  ;;  %v2555_v35 = vunpack.i.l.bf16 %v2554_v57  ;;  %v2549_v38 = vpop.permute.xlu0 %2548 }
 0x9b5   :  { %v2551_v19 = vunpack.i.h.bf16 %v2549_v38  ;;  %v2550_v21 = vunpack.i.l.bf16 %v2549_v38 }
 0x9b6   :  { %v1559_v3 = vsel %vm314_vm10, %v1555_v48, %v2556_v4  ;;  %v1558_v7 = vsel %vm314_vm10, %v1554_v43, %v2555_v35 }
 0x9b7   :  { %v1561_v5 = vpack.c.bf16 %v1559_v3, %v1558_v7  ;;  %v1556_v1 = vsel %vm314_vm10, %v1552_v27, %v2550_v21  ;;  %v1557_v6 = vsel %vm314_vm10, %v1553_v36, %v2551_v19  ;;  %v626_v8 = vpop.permute.xlu1 %625  ;;  %v2579_v3 = vld [vmem:[%s3454_s13] sm:$0xff]   ;;  %v2635_v7 = vmov 0.0  }
 0x9b8   :  { %v1560_v9 = vpack.c.bf16 %v1557_v6, %v1556_v1  ;;  %637 = vst.msk [vmem:[#allocation2 + $0x8] sm:$0xff] %vm635_vm12, %v626_v8  ;;  %v624_v10 = vpop.permute.xlu0 %623  ;;  %2361 = vmatprep.subr.bf16.mxu0 %v2635_v7  ;;  %2373 = vmatprep.subr.bf16.mxu1 %v2635_v7  ;;  %v2581_v1 = vld [vmem:[%s3454_s13 + $0x10] sm:$0xff]   ;;  %v2582_v6 = vld [vmem:[%s3454_s13 + $0x18] sm:$0xff]   ;;  %v2583_v8 = vld [vmem:[%s3456_s15] sm:$0xff]  }
 0x9b9   :  { %636 = vst.msk [vmem:[#allocation2] sm:$0xff] %vm635_vm12, %v624_v10  ;;  %v2585_v10 = vld [vmem:[%s3456_s15 + $0x10] sm:$0xff]  }
 0x9ba   :  { %2345 = vmatprep.mubr.msk.bf16.mxu0 %vm340_vm11, %v1560_v9  ;;  %v2584_v9 = vld [vmem:[%s3456_s15 + $0x8] sm:$0xff]  }
 0x9bb   :  { %v630_v11 = vpop.permute.xlu1 %629  ;;  %2346 = vmatmul.mubr.msk.bf16.vlgmr.msra.gmra.mrb[16].mxu0 %vm340_vm11, %v1561_v5  ;;  %v2580_v5 = vld [vmem:[%s3454_s13 + $0x8] sm:$0xff]  }
 0x9bc   :  { %639 = vst.msk [vmem:[#allocation2 + $0x18] sm:$0xff] %vm635_vm12, %v630_v11  ;;  %v628_v12 = vpop.permute.xlu0 %627  ;;  %2362 = vmatpush3.bf16.msra.mxu0 %v2579_v3  ;;  %2369 = vmatprep.mubr.msk.bf16.mxu0 %vm2636_vm3, %v2635_v7  ;;  %v2586_v11 = vld [vmem:[%s3456_s15 + $0x18] sm:$0xff]  }
 0x9bd   :  { %638 = vst.msk [vmem:[#allocation2 + $0x10] sm:$0xff] %vm635_vm12, %v628_v12  ;;  %2363 = vmatprep.subr.bf16.mxu0 %v2635_v7  ;;  %v2587_v12 = vld [vmem:[%s3456_s15 + $0x20] sm:$0xff]  }
 0x9bf   :  { %v836_v14 = vpop.permute.xlu1 %835 }
 0x9c0   :  { %847 = vst.msk [vmem:[#allocation2 + $0x8] sm:$0xff] %vm845_vm13, %v836_v14  ;;  %v834_v15 = vpop.permute.xlu0 %833  ;;  %2364 = vmatpush3.bf16.msra.mxu0 %v2580_v5  ;;  %v2588_v14 = vld [vmem:[%s3456_s15 + $0x28] sm:$0xff]  }
 0x9c1   :  { %846 = vst.msk [vmem:[#allocation2] sm:$0xff] %vm845_vm13, %v834_v15  ;;  %2365 = vmatprep.subr.bf16.mxu0 %v2635_v7  ;;  %v2202_v15 = vld [vmem:[%s3451_s10] ss:$0 sm:$0xff] }
 0x9c3   :  { %v840_v16 = vpop.permute.xlu1 %839 }
 0x9c4   :  { %849 = vst.msk [vmem:[#allocation2 + $0x18] sm:$0xff] %vm845_vm13, %v840_v16  ;;  %v838_v17 = vpop.permute.xlu0 %837  ;;  %2366 = vmatpush3.bf16.msra.mxu0 %v2581_v1 }
 0x9c5   :  { %848 = vst.msk [vmem:[#allocation2 + $0x10] sm:$0xff] %vm845_vm13, %v838_v17  ;;  %2367 = vmatprep.subr.bf16.mxu0 %v2635_v7 }
 0x9c7   :  { %v1046_v18 = vpop.permute.xlu1 %1045 }
 0x9c8   :  { %1057 = vst.msk [vmem:[#allocation2 + $0x8] sm:$0xff] %vm1055_vm14, %v1046_v18  ;;  %v1044_v20 = vpop.permute.xlu0 %1043  ;;  %2368 = vmatpush3.bf16.msra.mxu0 %v2582_v6 }
 0x9c9   :  { %1056 = vst.msk [vmem:[#allocation2] sm:$0xff] %vm1055_vm14, %v1044_v20  ;;  %v2209_v20 = vld [vmem:[%s3452_s11] ss:$0 sm:$0xff] }
 0x9cb   :  { %v1050_v23 = vpop.permute.xlu1 %1049 }
 0x9cc   :  { %1059 = vst.msk [vmem:[#allocation2 + $0x18] sm:$0xff] %vm1055_vm14, %v1050_v23  ;;  %v1048_v32 = vpop.permute.xlu0 %1047 }
 0x9cd   :  { %1058 = vst.msk [vmem:[#allocation2 + $0x10] sm:$0xff] %vm1055_vm14, %v1048_v32 }
 0x9cf   :  { %v1256_v25 = vpop.permute.xlu1 %1255 }
 0x9d0   :  { %1267 = vst.msk [vmem:[#allocation2 + $0x8] sm:$0xff] %vm1265_vm15, %v1256_v25  ;;  %v1254_v39 = vpop.permute.xlu0 %1253 }
 0x9d1   :  { %1266 = vst.msk [vmem:[#allocation2] sm:$0xff] %vm1265_vm15, %v1254_v39 }
 0x9d3   :  { %v1260_v37 = vpop.permute.xlu1 %1259 }
 0x9d4   :  { %1269 = vst.msk [vmem:[#allocation2 + $0x18] sm:$0xff] %vm1265_vm15, %v1260_v37  ;;  %v1258_v34 = vpop.permute.xlu0 %1257 }
 0x9d5   :  { %1268 = vst.msk [vmem:[#allocation2 + $0x10] sm:$0xff] %vm1265_vm15, %v1258_v34  ;;  %v2210_v34 = vld [vmem:[%s3453_s12] ss:$0 sm:$0xff] }
 0x9d7   :  { %v1466_v26 = vpop.permute.xlu1 %1465 }
 0x9d8   :  { %1477 = vst.msk [vmem:[#allocation2 + $0x8] sm:$0xff] %vm1475_vm1, %v1466_v26  ;;  %v1464_v29 = vpop.permute.xlu0 %1463 }
 0x9d9   :  { %1476 = vst.msk [vmem:[#allocation2] sm:$0xff] %vm1475_vm1, %v1464_v29 }
 0x9db   :  { %v1470_v30 = vpop.permute.xlu1 %1469 }
 0x9dc   :  { %1479 = vst.msk [vmem:[#allocation2 + $0x18] sm:$0xff] %vm1475_vm1, %v1470_v30  ;;  %v1468_v31 = vpop.permute.xlu0 %1467 }
 0x9dd   :  { %1478 = vst.msk [vmem:[#allocation2 + $0x10] sm:$0xff] %vm1475_vm1, %v1468_v31 }
 0xa8e   :  { %v2347_v42 = vpop.f32.mrb[16].mxu0 }
 0xa8f   :  { %v1635_v44 = vadd.f32 %v2347_v42, %v2193_v41  ;;  %v1626_v46 = vpop.f32.mrb[17].mxu0 }
 0xa90   :  { %v1627_v49 = vadd.f32 %v2193_v41, %v1626_v46  ;;  %v2348_v51 = vpop.f32.mrb[18].mxu0 }
 0xa91   :  { %v1638_v53 = vadd.f32 %v2348_v51, %v2193_v41  ;;  %v1629_v54 = vpop.f32.mrb[19].mxu0  ;;  %v1643_v56 = vmax.f32 %v1635_v44, 0.0 }
 0xa92   :  { %v1641_v58 = vmax.f32 %v1627_v49, 0.0  ;;  %v1630_v60 = vadd.f32 %v2193_v41, %v1629_v54 }
 0xa93   :  { %v1644_v2 = vmax.f32 %v1638_v53, 0.0  ;;  %v1655_v50 = vmul.f32 %v2199_v52, %v1643_v56 }
 0xa94   :  { %v1653_v0 = vmul.f32 %v2199_v52, %v1641_v58  ;;  %v1642_v45 = vmax.f32 %v1630_v60, 0.0 }
 0xa95   :  { %v1656_v28 = vmul.f32 %v2199_v52, %v1644_v2  ;;  %v1667_v57 = vadd.f32 %v2201_v61, %v1655_v50 }
 0xa96   :  { %v1654_v22 = vmul.f32 %v2199_v52, %v1642_v45  ;;  %v1665_v24 = vadd.f32 %v2201_v61, %v1653_v0 }
 0xa97   :  { %v1668_v59 = vadd.f32 %v2201_v61, %v1656_v28 }
 0xa98   :  { %1673 = vrot.lane.b32.xlu0 %v1665_v24, %s2634_s7  ;;  %v1666_v33 = vadd.f32 %v2201_v61, %v1654_v22 }
 0xa9a   :  { %1675 = vrot.lane.b32.xlu1 %v1666_v33, %s2634_s7 }
 0xa9c   :  { %1677 = vrot.lane.b32.xlu0 %v1667_v57, %s2634_s7 }
 0xa9e   :  { %1679 = vrot.lane.b32.xlu1 %v1668_v59, %s2634_s7 }
 0xb0a   :  { %v1674_v63 = vpop.permute.xlu0 %1673 }
 0xb0b   :  { %1686 = vst.msk [vmem:[#allocation2] sm:$0xff] %vm1685_vm2, %v1674_v63 }
 0xb0c   :  { %v1676_v4 = vpop.permute.xlu1 %1675 }
 0xb0d   :  { %1687 = vst.msk [vmem:[#allocation2 + $0x8] sm:$0xff] %vm1685_vm2, %v1676_v4 }
 0xb0e   :  { %v1678_v35 = vpop.permute.xlu0 %1677 }
 0xb0f   :  { %1688 = vst.msk [vmem:[#allocation2 + $0x10] sm:$0xff] %vm1685_vm2, %v1678_v35 }
 0xb10   :  { %v1680_v38 = vpop.permute.xlu1 %1679 }
 0xb11   :  { %1689 = vst.msk [vmem:[#allocation2 + $0x18] sm:$0xff] %vm1685_vm2, %v1680_v38 }
 0xb12   :  { %v1690_v43 = vld [vmem:[#allocation2] sm:$0xff] }
 0xb14   :  { %v1691_v48 = vld [vmem:[#allocation2 + $0x8] sm:$0xff] }
 0xb15   :  { %v1694_v19 = vpack.c.bf16 %v1691_v48, %v1690_v43 }
 0xb16   :  { %v1692_v21 = vld [vmem:[#allocation2 + $0x10] sm:$0xff] }
 0xb17   :  { %2357 = vmatprep.mubr.msk.bf16.mxu1 %vm103_vm0, %v1694_v19 }
 0xb18   :  { %v1693_v27 = vld [vmem:[#allocation2 + $0x18] sm:$0xff] }
 0xb19   :  { %v1695_v36 = vpack.c.bf16 %v1693_v27, %v1692_v21  ;;  %v2589_v21 = vld [vmem:[%s3456_s15 + $0x30] sm:$0xff]   ;;  %v2590_v27 = vld [vmem:[%s3456_s15 + $0x38] sm:$0xff]  }
 0xb1b   :  { %2358 = vmatmul.mubr.msk.bf16.vlgmr.msra.gmra.mrb[12].mxu1 %vm103_vm0, %v1695_v36  ;;  %v2211_v36 = vld [vmem:[%s3455_s14] ss:$0 sm:$0xff]  ;;  %s2638_s14 = smov [#allocation3]  }
 0xb1c   :  { %2389 = vmatprep.mubr.msk.bf16.mxu1 %vm2636_vm3, %v2635_v7  ;;  %2374 = vmatpush3.bf16.msra.mxu1 %v2583_v8  ;;  %s2097_s15 = sshll.u32 %s2638_s14, 4  ;;  %s2098_s15 = int_to_ptr.vmem [resolvable:$true] %s2097_s15 }
 0xb1d   :  { %2375 = vmatprep.subr.bf16.mxu1 %v2635_v7  ;;  %s2599_s6 = scalar_lea.vmem %s2098_s15, 512  ;;  %p2604_p1 = scmp.lt.s32.totalorder %s2098_s15, %s2098_s15 }
 0xb1e   :  { %p2600_p0 = scmp.ne.s32.totalorder %s2098_s15, %s2599_s6  ;;  %p2605_p2 = scmp.lt.s32.totalorder %s2599_s6, %s2599_s6 }
 0xb20   :  { %2376 = vmatpush3.bf16.msra.mxu1 %v2584_v9  ;;  %p2606_p3 = por %p2605_p2, %p2604_p1 }
 0xb21   :  { %2377 = vmatprep.subr.bf16.mxu1 %v2635_v7 }
 0xb22   :  { %p2607_p4 = pnand %p2606_p3, %p2600_p0 }
 0xb24   :  { %2378 = vmatpush3.bf16.msra.mxu1 %v2585_v10 }
 0xb25   :  { %2379 = vmatprep.subr.bf16.mxu1 %v2635_v7 }
 0xb28   :  { %2380 = vmatpush3.bf16.msra.mxu1 %v2586_v11 }
 0xb29   :  { %2381 = vmatprep.subr.bf16.mxu1 %v2635_v7 }
 0xb2c   :  { %2382 = vmatpush3.bf16.msra.mxu1 %v2587_v12 }
 0xb2d   :  { %2383 = vmatprep.subr.bf16.mxu1 %v2635_v7 }
 0xb30   :  { %2384 = vmatpush3.bf16.msra.mxu1 %v2588_v14 }
 0xb31   :  { %2385 = vmatprep.subr.bf16.mxu1 %v2635_v7 }
 0xb34   :  { %2386 = vmatpush3.bf16.msra.mxu1 %v2589_v21 }
 0xb35   :  { %2387 = vmatprep.subr.bf16.mxu1 %v2635_v7  ;;  %v2217_v7 = vld [vmem:[%s3457_s16] ss:$0 sm:$0xff] }
 0xb38   :  { %2388 = vmatpush3.bf16.msra.mxu1 %v2590_v27 }
 0xbee   :  { %v2359_v16 = vpop.f32.mrb[12].mxu1 }
 0xbef   :  { %v1784_v17 = vadd.f32 %v2359_v16, %v2202_v15  ;;  %v1775_v18 = vpop.f32.mrb[13].mxu1 }
 0xbf0   :  { %v1776_v23 = vadd.f32 %v2202_v15, %v1775_v18  ;;  %v2360_v32 = vpop.f32.mrb[14].mxu1 }
 0xbf1   :  { %v1792_v25 = vmax.f32 %v1784_v17, 0.0  ;;  %v1787_v39 = vadd.f32 %v2360_v32, %v2202_v15  ;;  %v1778_v37 = vpop.f32.mrb[15].mxu1 }
 0xbf2   :  { %v1790_v26 = vmax.f32 %v1776_v23, 0.0  ;;  %v1779_v29 = vadd.f32 %v2202_v15, %v1778_v37  ;;  %v2637_v23 = vmov 1966171168  }
 0xbf3   :  { %v1803_v30 = vmul.f32 %v2209_v20, %v1792_v25  ;;  %v1793_v31 = vmax.f32 %v1787_v39, 0.0  ;;  %v2049_v32 = vunpack.c.l.s4 %v2637_v23 }
 0xbf4   :  { %v1801_v40 = vmul.f32 %v2209_v20, %v1790_v26  ;;  %v1791_v41 = vmax.f32 %v1779_v29, 0.0  ;;  %v2072_v26 = vsub.s32 0, %v2759_v13 }
 0xbf5   :  { %v3376_v42 = vadd.f32 %v2210_v34, %v1803_v30  ;;  %v1804_v44 = vmul.f32 %v2209_v20, %v1793_v31  ;;  %v2050_v25 = vunpack.c.0.s8 %v2049_v32 }
 0xbf6   :  { %v3378_v46 = vadd.f32 %v2210_v34, %v1801_v40  ;;  %v1802_v47 = vmul.f32 %v2209_v20, %v1791_v41 }
 0xbf7   :  { %v3380_v49 = vadd.f32 %v2210_v34, %v1804_v44  ;;  %v1825_v52 = vsel %vm103_vm0, %v3376_v42, 0.0  ;;  %v2053_v39 = vsub.s32 %v2050_v25, %v2759_v13 }
 0xbf8   :  { %v3382_v51 = vadd.f32 %v2210_v34, %v1802_v47  ;;  %v1816_v54 = vsel %vm103_vm0, %v3378_v46, 0.0 }
 0xbf9   :  { %v1826_v53 = vsel %vm103_vm0, %v3380_v49, 0.0 }
 0xbfa   :  { %v1827_v55 = vadd.f32 %v1826_v53, %v1825_v52  ;;  %v1817_v56 = vsel %vm103_vm0, %v3382_v51, 0.0 }
 0xbfb   :  { %v1818_v58 = vadd.f32 %v1817_v56, %v1816_v54  ;;  %v2595_v54 = vld [vmem:[%s3464_s19] sm:$0xff] }
 0xbfc   :  { %v1828_v60 = vrot.slane %v1827_v55, 4 }
 0xbfd   :  { %v1819_v61 = vrot.slane %v1818_v58, 4 }
 0xbfe   :  { %v1829_v62 = vadd.f32 %v1828_v60, %v1827_v55  ;;  %v2596_v55 = vld [vmem:[%s3464_s19 + $0x8] sm:$0xff] }
 0xbff   :  { %v1820_v0 = vadd.f32 %v1819_v61, %v1818_v58 }
 0xc00   :  { %v1830_v2 = vrot.slane %v1829_v62, 2 }
 0xc01   :  { %v1821_v45 = vrot.slane %v1820_v0, 2 }
 0xc02   :  { %v1831_v50 = vadd.f32 %v1830_v2, %v1829_v62 }
 0xc03   :  { %v1822_v22 = vadd.f32 %v1821_v45, %v1820_v0 }
 0xc04   :  { %v1832_v24 = vrot.slane %v1831_v50, 1 }
 0xc05   :  { %v1823_v28 = vrot.slane %v1822_v22, 1 }
 0xc06   :  { %v1833_v33 = vadd.f32 %v1832_v24, %v1831_v50 }
 0xc07   :  { %v1824_v57 = vadd.f32 %v1823_v28, %v1822_v22 }
 0xc08   :  { %v1836_v59 = vmul.f32 0.0625, %v1833_v33 }
 0xc09   :  { %v1835_v63 = vmul.f32 0.0625, %v1824_v57 }
 0xc0a   :  { %v1838_v4 = vpack.c.bf16 %v1836_v59, %v1836_v59 }
 0xc0b   :  { %v1837_v35 = vpack.c.bf16 %v1835_v63, %v1835_v63 }
 0xc0c   :  { %v1857_v38 = vunpack.c.l.b16 %v1838_v4 }
 0xc0d   :  { %v1856_v43 = vunpack.c.l.b16 %v1837_v35 }
 0xc0f   :  { %v1859_v48 = vsel %vm1858_vm4, %v1857_v38, %v1856_v43 }
 0xc10   :  { %v1860_v19 = vpack.c.b16 %v1859_v48, %v1859_v48 }
 0xc12   :  { %2370 = vmatmul.mubr.msk.bf16.vlgmr.msra.gmra.mrb[20].mxu0 %vm103_vm0, %v1860_v19 }
 0xce5   :  { %v1922_v3 = vpop.f32.mrb[20].mxu0 }
 0xce6   :  { %v1923_v5 = vadd.f32 %v2211_v36, %v1922_v3  ;;  %v2371_v1 = vpop.f32.mrb[21].mxu0 }
 0xce7   :  { %v1925_v6 = vpop.f32.mrb[22].mxu0 }
 0xce8   :  { %v1928_v8 = vmax.f32 %v1923_v5, 0.0  ;;  %v2372_v9 = vpop.f32.mrb[23].mxu0 }
 0xcea   :  { %v1929_v10 = vpack.c.bf16 %v1928_v8, %v1928_v8 }
 0xcec   :  { %2390 = vmatmul.mubr.bf16.vlgmr.msra.gmra.mrb[16].mxu1 %v1929_v10 }
 0xdbf   :  { %v2035_v11 = vpop.f32.mrb[16].mxu1 }
 0xdc0   :  { %v2036_v12 = vadd.f32 %v2217_v7, %v2035_v11  ;;  %v2391_v14 = vpop.f32.mrb[17].mxu1 }
 0xdc1   :  { %v2038_v15 = vpop.f32.mrb[18].mxu1 }
 0xdc2   :  { %v2226_v16 = vmul.f32 -1.442695, %v2036_v12  ;;  %v2392_v17 = vpop.f32.mrb[19].mxu1 }
 0xdc4   :  { %2591 = vpow2.f32 %v2226_v16 }
 0xdce   :  { %v2592_v18 = vpop.eup %2591 }
 0xdcf   :  { %v2044_v20 = vadd.f32 1.0, %v2592_v18 }
 0xdd1   :  { %2593 = vrcp.f32 %v2044_v20 }
 0xddb   :  { %v2594_v37 = vpop.eup %2593 }
 0xddc   :  { %v2054_v34 = vrot.slane %v2594_v37, %v2053_v39 }
 0xdde   :  { %v2055_v29 = vcombine.high %v2054_v34, %v2054_v34  ;;  %v2062_v30 = vrot.slane %v2054_v34, %v2053_v39 }
 0xde0   :  { %v2069_v31 = vrot.slane %v2055_v29, %v2053_v39  ;;  %v2073_v40 = vrot.slane %v2062_v30, %v2072_v26 }
 0xde2   :  { %v2077_v41 = vrot.slane %v2069_v31, %v2072_v26  ;;  %v2080_v44 = vmul.f32 %v2073_v40, %v3378_v46  ;;  %v2081_v47 = vmul.f32 %v2073_v40, %v3382_v51  ;;  %v2597_v46 = vld [vmem:[%s3464_s19 + $0x10] sm:$0xff] }
 0xde4   :  { %v2082_v52 = vmul.f32 %v2077_v41, %v3376_v42  ;;  %v2083_v53 = vmul.f32 %v2077_v41, %v3380_v49  ;;  %v2084_v13 = vadd.f32 %v2595_v54, %v2080_v44  ;;  %v2085_v56 = vadd.f32 %v2596_v55, %v2081_v47  ;;  %v2598_v42 = vld [vmem:[%s3464_s19 + $0x18] sm:$0xff] }
 0xde6   :  { %v2086_v51 = vadd.f32 %v2597_v46, %v2082_v52  ;;  %v2087_v49 = vadd.f32 %v2598_v42, %v2083_v53  ;;  %2088 = vst.msk [vmem:[#allocation3] sm:$0xff] %vm103_vm0, %v2084_v13  ;;  %2089 = vst.msk [vmem:[#allocation3 + $0x8] sm:$0xff] %vm103_vm0, %v2085_v56 }
 0xde8   :  { %2090 = vst.msk [vmem:[#allocation3 + $0x10] sm:$0xff] %vm103_vm0, %v2086_v51  ;;  %2091 = vst.msk [vmem:[#allocation3 + $0x18] sm:$0xff] %vm103_vm0, %v2087_v49 }
 0xde9   :  { %2610 = shalt.err (!%p2607_p4)
}
 0xdea   :  { %s2611_s19 = scalar_lea.hbm %s3458_s17, 512 }
 0xdeb   :  { %p2612_p5 = scmp.ne.s32.totalorder %s3458_s17, %s2611_s19  ;;  %p2615_p6 = scmp.lt.u32.totalorder %s2611_s19, %s3458_s17 }
 0xded   :  { %p2617_p7 = pnand %p2615_p6, %p2612_p5 }
 0xdef   :  { %2620 = shalt.err (!%p2617_p7)
}
 0xdf0   :  { %s2639_s9 = smov 128  }
 0xdf1   :  { %2103 = dma.vmem_to_hbm [thread:$0]  %s2098_s15, 512, %s3458_s17, [#allocation4], %s2639_s9, %s2639_s9, %s2623_s20  }
 0xdf2   :  { %2621 = dma.done.wait [#allocation4], 512  }
 0xdf3   :  { %2622 = vsyncadd [#allocation4], 4294966784 }
 0xdf4   :  { %2107 = vsyncpa [#allocation4], 1 }

</bundles_post_ra>
